<compile_context>
chip_gen: v5e
topology: v5e:2x2
jax: 0.10.0
libtpu: 0.0.40
codegen_flags: <defaults>
</compile_context>

<pallas_src>
import jax
import jax.numpy as jnp
from jax import lax
from jax.experimental import pallas as pl
from jax.experimental.pallas import tpu as pltpu

# ---------------- model dimensions (match PP.__init__) ----------------
S0_IN = 4
SS_IN = 22
S0_HID = 128
SS_HID = 256
S0_Z = 4
SS_Z = 12
EMB_DIM = 24
NUM_CLASSES = 12                 # rows of the embedding table
ENC_IN = S0_IN + SS_IN           # 26  (fused first-layer input)
ENC_HID = S0_HID + SS_HID        # 384 (fused first-layer output)
CONCAT = 32                      # lanes: z0[0:4] | zs[4:16] | one_hot[16:28] | 0
SKILL_OFF = S0_Z + SS_Z          # 16
PRED_HID = 400
PRED_HID_PAD = 512               # lane-dense padding of 400
OUT = 200
OUT_PAD = 256                    # lane-dense padding of 200


def _relu(x):
    return jnp.maximum(x, 0.0)


def _dot(x, w):
    # bf16 MXU inputs, f32 accumulation (weights are already bf16).
    return jnp.dot(x.astype(jnp.bfloat16), w, preferred_element_type=jnp.float32)


def pp_kernel(
    labels_ref, xin_ref, eps_ref,
    # fused encoder first layer (block-diagonal) + second layers
    w1_bd, b1_bd, a_w2, a_b2, b_w2, b_b2,
    # fused (mu | log_sigma) heads of both branches -> 64 lanes
    a_wh, b_wh, head_b,
    # predictor head (pw1 stacked with embedding folded in; dims lane-padded)
    p_w1, p_b1, p_w2, p_b2, p_w3, p_b3,
    out_ref,
):
    TB = xin_ref.shape[0]

    # ---- fused first encoder layer: (TB, 26) @ (26, 384) block-diagonal ----
    h = _relu(_dot(xin_ref[...], w1_bd[...]) + b1_bd[...])        # (TB, 384)
    h0 = h[:, :S0_HID]                                            # (TB, 128)
    hs = h[:, S0_HID:]                                            # (TB, 256)

    # ---- second encoder layers ----
    h0 = _relu(_dot(h0, a_w2[...]) + a_b2[...])                   # (TB, 128)
    hs = _relu(_dot(hs, b_w2[...]) + b_b2[...])                   # (TB, 256)

    # ---- fused heads: lanes 0:32 = [mu0|mus|0], lanes 32:64 = [lv0|lvs|0] ----
    heads = _dot(h0, a_wh[...]) + _dot(hs, b_wh[...]) + head_b[...]   # (TB, 64)
    mu = heads[:, :CONCAT]                                        # (TB, 32)
    lv = heads[:, CONCAT:]                                        # (TB, 32)

    # ---- reparameterize + place one-hot(labels) at lanes [16, 28) ----
    # eps_ref has eps0 in lanes 0:4, epss in 4:16, zeros elsewhere, so the
    # zero-padded lanes stay exactly zero (exp(0)=1 times eps=0 plus mu=0).
    lane = lax.broadcasted_iota(jnp.int32, (TB, CONCAT), 1)
    onehot = (labels_ref[...] + SKILL_OFF == lane).astype(jnp.float32)
    x = eps_ref[...] * jnp.exp(0.5 * lv) + mu + onehot            # (TB, 32)

    # ---- predictor MLP (single fused first matmul; embedding pre-folded) ----
    p = _relu(_dot(x, p_w1[...]) + p_b1[...])                     # (TB, 512)
    p = _relu(_dot(p, p_w2[...]) + p_b2[...])                     # (TB, 512)
    out_ref[...] = _dot(p, p_w3[...]) + p_b3[...]                 # (TB, 256)


def _round_up(x, m):
    return ((x + m - 1) // m) * m


def _prepare_params(params, embedding):
    """Build the fused / padded / bf16 weight set.

    All zero padding propagates exact zeros through the ReLUs; the embedding
    fold (one_hot @ (emb @ W) == (one_hot @ emb) @ W) is exact.  Weights are
    cast to bf16 (MXU inputs); biases stay f32 (added post-accumulation)."""
    (a_w1, a_b1, a_w2, a_b2, a_wmu, a_bmu, a_wls, a_bls,
     b_w1, b_b1, b_w2, b_b2, b_wmu, b_bmu, b_wls, b_bls,
     p_w1, p_b1, p_w2, p_b2, p_w3, p_b3) = params
    f32 = jnp.float32

    nc = embedding.shape[0]
    assert SKILL_OFF + nc <= CONCAT, "one-hot classes must fit in the 32-lane concat"

    # Block-diagonal fused first encoder layer.
    w1_bd = jnp.zeros((ENC_IN, ENC_HID), f32)
    w1_bd = w1_bd.at[:S0_IN, :S0_HID].set(a_w1)
    w1_bd = w1_bd.at[S0_IN:, S0_HID:].set(b_w1)
    b1_bd = jnp.concatenate([a_b1, b_b1], axis=1)                 # (1, 384)

    # Fused (mu | log_sigma) heads, laid out at their concat lane offsets.
    a_wh = jnp.zeros((S0_HID, 2 * CONCAT), f32)
    a_wh = a_wh.at[:, 0:S0_Z].set(a_wmu)
    a_wh = a_wh.at[:, CONCAT:CONCAT + S0_Z].set(a_wls)
    b_wh = jnp.zeros((SS_HID, 2 * CONCAT), f32)
    b_wh = b_wh.at[:, S0_Z:SKILL_OFF].set(b_wmu)
    b_wh = b_wh.at[:, CONCAT + S0_Z:CONCAT + SKILL_OFF].set(b_wls)
    head_b = jnp.zeros((1, 2 * CONCAT), f32)
    head_b = head_b.at[:, 0:S0_Z].set(a_bmu)
    head_b = head_b.at[:, S0_Z:SKILL_OFF].set(b_bmu)
    head_b = head_b.at[:, CONCAT:CONCAT + S0_Z].set(a_bls)
    head_b = head_b.at[:, CONCAT + S0_Z:CONCAT + SKILL_OFF].set(b_bls)

    # Predictor: pad 400->512 / 200->256, stack pw1 rows at concat offsets and
    # fold the embedding table into the skill rows.
    hp = PRED_HID_PAD - PRED_HID
    op = OUT_PAD - OUT
    p_w1p = jnp.pad(p_w1, ((0, 0), (0, hp)))                      # (40, 512)
    w1s = jnp.zeros((CONCAT, PRED_HID_PAD), f32)
    w1s = w1s.at[:SKILL_OFF, :].set(p_w1p[:SKILL_OFF])            # z0 | zs rows
    w1s = w1s.at[SKILL_OFF:SKILL_OFF + nc, :].set(
        jnp.dot(embedding, p_w1p[SKILL_OFF:], preferred_element_type=f32))
    p_b1p = jnp.pad(p_b1, ((0, 0), (0, hp)))                      # (1, 512)
    p_w2p = jnp.pad(p_w2, ((0, hp), (0, hp)))                     # (512, 512)
    p_b2p = jnp.pad(p_b2, ((0, 0), (0, hp)))                      # (1, 512)
    p_w3p = jnp.pad(p_w3, ((0, hp), (0, op)))                     # (512, 256)
    p_b3p = jnp.pad(p_b3, ((0, 0), (0, op)))                      # (1, 256)

    def c(w):
        return w.astype(jnp.bfloat16)

    return [c(w1_bd), b1_bd, c(a_w2), a_b2, c(b_w2), b_b2,
            c(a_wh), c(b_wh), head_b,
            c(w1s), p_b1p, c(p_w2p), p_b2p, c(p_w3p), p_b3p]


def pp_forward(labels, embedding, s0, ss, eps0, epss, params, *, row_tile=256):
    B = s0.shape[0]
    # Row tile 256 amortizes per-grid-step overhead and redundant MXU weight
    # pushes; small batches fall back to the sublane-rounded batch (single tile).
    TB = row_tile if B >= row_tile else _round_up(B, 8)
    Bp = _round_up(B, TB)
    num_tiles = Bp // TB

    # Wrapper-side input plumbing (free relative to the kernel):
    xin = jnp.concatenate([s0, ss], axis=1)                       # (B, 26)
    eps = jnp.zeros((B, CONCAT), jnp.float32)
    eps = eps.at[:, :S0_Z].set(eps0).at[:, S0_Z:SKILL_OFF].set(epss)
    labels = labels.reshape(B, 1).astype(jnp.int32)

    def pad_rows(x):
        pad = Bp - x.shape[0]
        return jnp.pad(x, ((0, pad), (0, 0))) if pad else x

    labels_p, xin_p, eps_p = pad_rows(labels), pad_rows(xin), pad_rows(eps)
    weights = _prepare_params(params, embedding)

    def row_spec(d):
        return pl.BlockSpec((TB, d), lambda i: (i, 0))

    def const_spec(arr):
        # Full-array block, constant index -> DMA'd once, VMEM-resident
        # across all batch tiles.
        return pl.BlockSpec(arr.shape, lambda i: (0, 0))

    operands = [labels_p, xin_p, eps_p] + weights
    in_specs = [row_spec(1), row_spec(ENC_IN), row_spec(CONCAT)] \
        + [const_spec(w) for w in weights]

    flops_per_row = 2 * (
        ENC_IN * ENC_HID
        + S0_HID * S0_HID + SS_HID * SS_HID
        + (S0_HID + SS_HID) * 2 * CONCAT
        + CONCAT * PRED_HID_PAD + PRED_HID_PAD * PRED_HID_PAD
        + PRED_HID_PAD * OUT_PAD)
    bytes_accessed = (sum(int(x.size) * x.dtype.itemsize for x in operands)
                      + Bp * OUT_PAD * 4)

    compiler_kwargs = dict(dimension_semantics=("parallel",))
    if TB >= 512:
        # Larger tiles on v5e need more than the default 16 MiB scoped VMEM.
        compiler_kwargs["vmem_limit_bytes"] = 32 * 1024 * 1024

    out = pl.pallas_call(
        pp_kernel,
        out_shape=jax.ShapeDtypeStruct((Bp, OUT_PAD), jnp.float32),
        grid=(num_tiles,),
        in_specs=in_specs,
        out_specs=pl.BlockSpec((TB, OUT_PAD), lambda i: (i, 0)),
        compiler_params=pltpu.CompilerParams(**compiler_kwargs),
        cost_estimate=pl.CostEstimate(
            flops=flops_per_row * Bp,
            transcendentals=Bp * CONCAT,
            bytes_accessed=bytes_accessed),
    )(*operands)
    return out[:B, :OUT]


def init_params(key):
    """Deterministic synthetic parameters. Weights stored (in, out), biases (1, out)."""
    def lin(key, din, dout):
        kw, kb = jax.random.split(key)
        scale = 1.0 / jnp.sqrt(jnp.float32(din))
        w = jax.random.uniform(kw, (din, dout), jnp.float32, -scale, scale)
        b = jax.random.uniform(kb, (1, dout), jnp.float32, -scale, scale)
        return w, b

    keys = jax.random.split(key, 11)
    params = []
    # s0 branch
    params += lin(keys[0], S0_IN, S0_HID)
    params += lin(keys[1], S0_HID, S0_HID)
    params += lin(keys[2], S0_HID, S0_Z)     # mu
    params += lin(keys[3], S0_HID, S0_Z)     # log_sigma
    # ss branch
    params += lin(keys[4], SS_IN, SS_HID)
    params += lin(keys[5], SS_HID, SS_HID)
    params += lin(keys[6], SS_HID, SS_Z)     # mu
    params += lin(keys[7], SS_HID, SS_Z)     # log_sigma
    # predict head
    params += lin(keys[8], PRED_IN := S0_Z + SS_Z + EMB_DIM, PRED_HID)
    params += lin(keys[9], PRED_HID, PRED_HID)
    params += lin(keys[10], PRED_HID, OUT)
    return list(params)


if __name__ == "__main__":
    B = 8
    root = jax.random.PRNGKey(0)
    k_par, k_s0, k_ss, k_lab, k_emb, k_e0, k_es = jax.random.split(root, 7)

    params = init_params(k_par)

    s0 = jax.random.normal(k_s0, (B, S0_IN), jnp.float32)
    ss = jax.random.normal(k_ss, (B, SS_IN), jnp.float32)
    # labels in [0, NUM_CLASSES); include class NUM_CLASSES-1 so PyTorch's
    # F.one_hot (num_classes = max+1) would give the same width as embedding.
    labels = jax.random.randint(k_lab, (B, 1), 0, NUM_CLASSES, jnp.int32)
    labels = labels.at[0, 0].set(NUM_CLASSES - 1)
    embedding = jax.random.normal(k_emb, (NUM_CLASSES, EMB_DIM), jnp.float32)
    # reparameterization noise (torch.randn_like) passed in explicitly
    eps0 = jax.random.normal(k_e0, (B, S0_Z), jnp.float32)
    epss = jax.random.normal(k_es, (B, SS_Z), jnp.float32)

    out = jax.jit(pp_forward)(labels, embedding, s0, ss, eps0, epss, params)
    out = jax.block_until_ready(out)
    assert out.shape == (B, OUT) and out.dtype == jnp.float32
    assert bool(jnp.all(jnp.isfinite(out)))
    print("KERNEL_OK")
</pallas_src>

<mosaic_0001>
module attributes {stable_mosaic.version = 11 : i64} {
  func.func @pp_kernel(%arg0: i32, %arg1: memref<8x1xi32, #tpu.memory_space<vmem>>, %arg2: memref<8x26xf32, #tpu.memory_space<vmem>>, %arg3: memref<8x32xf32, #tpu.memory_space<vmem>>, %arg4: memref<26x384xbf16, #tpu.memory_space<vmem>>, %arg5: memref<1x384xf32, #tpu.memory_space<vmem>>, %arg6: memref<128x128xbf16, #tpu.memory_space<vmem>>, %arg7: memref<1x128xf32, #tpu.memory_space<vmem>>, %arg8: memref<256x256xbf16, #tpu.memory_space<vmem>>, %arg9: memref<1x256xf32, #tpu.memory_space<vmem>>, %arg10: memref<128x64xbf16, #tpu.memory_space<vmem>>, %arg11: memref<256x64xbf16, #tpu.memory_space<vmem>>, %arg12: memref<1x64xf32, #tpu.memory_space<vmem>>, %arg13: memref<32x512xbf16, #tpu.memory_space<vmem>>, %arg14: memref<1x512xf32, #tpu.memory_space<vmem>>, %arg15: memref<512x512xbf16, #tpu.memory_space<vmem>>, %arg16: memref<1x512xf32, #tpu.memory_space<vmem>>, %arg17: memref<512x256xbf16, #tpu.memory_space<vmem>>, %arg18: memref<1x256xf32, #tpu.memory_space<vmem>>, %arg19: memref<8x256xf32, #tpu.memory_space<vmem>>) attributes {dimension_semantics = [#tpu.dimension_semantics<parallel>], iteration_bounds = array<i64: 1>, scalar_prefetch = 0 : i64, scratch_operands = 0 : i64, tpu.core_type = #tpu.core_type<tc>, window_params = [{transform_indices = @transform_0, window_bounds = array<i64: 8, 1>}, {transform_indices = @transform_1, window_bounds = array<i64: 8, 26>}, {transform_indices = @transform_2, window_bounds = array<i64: 8, 32>}, {pipeline_mode = #tpu.pipeline_mode<synchronous>, transform_indices = @transform_3, window_bounds = array<i64: 26, 384>}, {pipeline_mode = #tpu.pipeline_mode<synchronous>, transform_indices = @transform_4, window_bounds = array<i64: 1, 384>}, {pipeline_mode = #tpu.pipeline_mode<synchronous>, transform_indices = @transform_5, window_bounds = array<i64: 128, 128>}, {pipeline_mode = #tpu.pipeline_mode<synchronous>, transform_indices = @transform_6, window_bounds = array<i64: 1, 128>}, {pipeline_mode = #tpu.pipeline_mode<synchronous>, transform_indices = @transform_7, window_bounds = array<i64: 256, 256>}, {pipeline_mode = #tpu.pipeline_mode<synchronous>, transform_indices = @transform_8, window_bounds = array<i64: 1, 256>}, {pipeline_mode = #tpu.pipeline_mode<synchronous>, transform_indices = @transform_9, window_bounds = array<i64: 128, 64>}, {pipeline_mode = #tpu.pipeline_mode<synchronous>, transform_indices = @transform_10, window_bounds = array<i64: 256, 64>}, {pipeline_mode = #tpu.pipeline_mode<synchronous>, transform_indices = @transform_11, window_bounds = array<i64: 1, 64>}, {pipeline_mode = #tpu.pipeline_mode<synchronous>, transform_indices = @transform_12, window_bounds = array<i64: 32, 512>}, {pipeline_mode = #tpu.pipeline_mode<synchronous>, transform_indices = @transform_13, window_bounds = array<i64: 1, 512>}, {pipeline_mode = #tpu.pipeline_mode<synchronous>, transform_indices = @transform_14, window_bounds = array<i64: 512, 512>}, {pipeline_mode = #tpu.pipeline_mode<synchronous>, transform_indices = @transform_15, window_bounds = array<i64: 1, 512>}, {pipeline_mode = #tpu.pipeline_mode<synchronous>, transform_indices = @transform_16, window_bounds = array<i64: 512, 256>}, {pipeline_mode = #tpu.pipeline_mode<synchronous>, transform_indices = @transform_17, window_bounds = array<i64: 1, 256>}, {transform_indices = @transform_18, window_bounds = array<i64: 8, 256>}]} {
    %c0 = arith.constant 0 : index
    %c0_0 = arith.constant 0 : index
    %0 = vector.load %arg2[%c0, %c0_0] : memref<8x26xf32, #tpu.memory_space<vmem>>, vector<8x26xf32>
    %c0_1 = arith.constant 0 : index
    %c0_2 = arith.constant 0 : index
    %1 = vector.load %arg4[%c0_1, %c0_2] : memref<26x384xbf16, #tpu.memory_space<vmem>>, vector<26x384xbf16>
    %2 = arith.truncf %0 : vector<8x26xf32> to vector<8x26xbf16>
    %cst = arith.constant dense<0.000000e+00> : vector<8x384xf32>
    %3 = tpu.matmul %2, %1, %cst {dimension_numbers = #tpu.dot_dimension_numbers<[1], [0], [0], [1], [0, 0, 1, 1], [], []>} : vector<8x26xbf16>, vector<26x384xbf16>, vector<8x384xf32> -> vector<8x384xf32>
    %c0_3 = arith.constant 0 : index
    %c0_4 = arith.constant 0 : index
    %4 = vector.load %arg5[%c0_3, %c0_4] : memref<1x384xf32, #tpu.memory_space<vmem>>, vector<1x384xf32>
    %5 = vector.broadcast %4 : vector<1x384xf32> to vector<8x384xf32>
    %6 = arith.addf %3, %5 : vector<8x384xf32>
    %cst_5 = arith.constant 0.000000e+00 : f32
    %7 = vector.broadcast %cst_5 : f32 to vector<8x384xf32>
    %8 = arith.maximumf %6, %7 : vector<8x384xf32>
    %9 = vector.extract_strided_slice %8 {offsets = [0, 0], sizes = [8, 128], strides = [1, 1]} : vector<8x384xf32> to vector<8x128xf32>
    %10 = vector.extract_strided_slice %8 {offsets = [0, 128], sizes = [8, 256], strides = [1, 1]} : vector<8x384xf32> to vector<8x256xf32>
    %c0_6 = arith.constant 0 : index
    %c0_7 = arith.constant 0 : index
    %11 = vector.load %arg6[%c0_6, %c0_7] : memref<128x128xbf16, #tpu.memory_space<vmem>>, vector<128x128xbf16>
    %12 = arith.truncf %9 : vector<8x128xf32> to vector<8x128xbf16>
    %cst_8 = arith.constant dense<0.000000e+00> : vector<8x128xf32>
    %13 = tpu.matmul %12, %11, %cst_8 {dimension_numbers = #tpu.dot_dimension_numbers<[1], [0], [0], [1], [0, 0, 1, 1], [], []>} : vector<8x128xbf16>, vector<128x128xbf16>, vector<8x128xf32> -> vector<8x128xf32>
    %c0_9 = arith.constant 0 : index
    %c0_10 = arith.constant 0 : index
    %14 = vector.load %arg7[%c0_9, %c0_10] : memref<1x128xf32, #tpu.memory_space<vmem>>, vector<1x128xf32>
    %15 = vector.broadcast %14 : vector<1x128xf32> to vector<8x128xf32>
    %16 = arith.addf %13, %15 : vector<8x128xf32>
    %cst_11 = arith.constant 0.000000e+00 : f32
    %17 = vector.broadcast %cst_11 : f32 to vector<8x128xf32>
    %18 = arith.maximumf %16, %17 : vector<8x128xf32>
    %c0_12 = arith.constant 0 : index
    %c0_13 = arith.constant 0 : index
    %19 = vector.load %arg8[%c0_12, %c0_13] : memref<256x256xbf16, #tpu.memory_space<vmem>>, vector<256x256xbf16>
    %20 = arith.truncf %10 : vector<8x256xf32> to vector<8x256xbf16>
    %cst_14 = arith.constant dense<0.000000e+00> : vector<8x256xf32>
    %21 = tpu.matmul %20, %19, %cst_14 {dimension_numbers = #tpu.dot_dimension_numbers<[1], [0], [0], [1], [0, 0, 1, 1], [], []>} : vector<8x256xbf16>, vector<256x256xbf16>, vector<8x256xf32> -> vector<8x256xf32>
    %c0_15 = arith.constant 0 : index
    %c0_16 = arith.constant 0 : index
    %22 = vector.load %arg9[%c0_15, %c0_16] : memref<1x256xf32, #tpu.memory_space<vmem>>, vector<1x256xf32>
    %23 = vector.broadcast %22 : vector<1x256xf32> to vector<8x256xf32>
    %24 = arith.addf %21, %23 : vector<8x256xf32>
    %cst_17 = arith.constant 0.000000e+00 : f32
    %25 = vector.broadcast %cst_17 : f32 to vector<8x256xf32>
    %26 = arith.maximumf %24, %25 : vector<8x256xf32>
    %c0_18 = arith.constant 0 : index
    %c0_19 = arith.constant 0 : index
    %27 = vector.load %arg10[%c0_18, %c0_19] : memref<128x64xbf16, #tpu.memory_space<vmem>>, vector<128x64xbf16>
    %28 = arith.truncf %18 : vector<8x128xf32> to vector<8x128xbf16>
    %cst_20 = arith.constant dense<0.000000e+00> : vector<8x64xf32>
    %29 = tpu.matmul %28, %27, %cst_20 {dimension_numbers = #tpu.dot_dimension_numbers<[1], [0], [0], [1], [0, 0, 1, 1], [], []>} : vector<8x128xbf16>, vector<128x64xbf16>, vector<8x64xf32> -> vector<8x64xf32>
    %c0_21 = arith.constant 0 : index
    %c0_22 = arith.constant 0 : index
    %30 = vector.load %arg11[%c0_21, %c0_22] : memref<256x64xbf16, #tpu.memory_space<vmem>>, vector<256x64xbf16>
    %31 = arith.truncf %26 : vector<8x256xf32> to vector<8x256xbf16>
    %cst_23 = arith.constant dense<0.000000e+00> : vector<8x64xf32>
    %32 = tpu.matmul %31, %30, %cst_23 {dimension_numbers = #tpu.dot_dimension_numbers<[1], [0], [0], [1], [0, 0, 1, 1], [], []>} : vector<8x256xbf16>, vector<256x64xbf16>, vector<8x64xf32> -> vector<8x64xf32>
    %33 = arith.addf %29, %32 : vector<8x64xf32>
    %c0_24 = arith.constant 0 : index
    %c0_25 = arith.constant 0 : index
    %34 = vector.load %arg12[%c0_24, %c0_25] : memref<1x64xf32, #tpu.memory_space<vmem>>, vector<1x64xf32>
    %35 = vector.broadcast %34 : vector<1x64xf32> to vector<8x64xf32>
    %36 = arith.addf %33, %35 : vector<8x64xf32>
    %37 = vector.extract_strided_slice %36 {offsets = [0, 0], sizes = [8, 32], strides = [1, 1]} : vector<8x64xf32> to vector<8x32xf32>
    %38 = vector.extract_strided_slice %36 {offsets = [0, 32], sizes = [8, 32], strides = [1, 1]} : vector<8x64xf32> to vector<8x32xf32>
    %39 = tpu.iota {dimensions = array<i32: 1>} : vector<8x32xi32>
    %c0_26 = arith.constant 0 : index
    %c0_27 = arith.constant 0 : index
    %40 = vector.load %arg1[%c0_26, %c0_27] : memref<8x1xi32, #tpu.memory_space<vmem>>, vector<8x1xi32>
    %c16_i32 = arith.constant 16 : i32
    %41 = vector.broadcast %c16_i32 : i32 to vector<8x1xi32>
    %42 = arith.addi %40, %41 : vector<8x1xi32>
    %43 = vector.broadcast %42 : vector<8x1xi32> to vector<8x32xi32>
    %44 = arith.cmpi eq, %43, %39 : vector<8x32xi32>
    %45 = arith.extui %44 : vector<8x32xi1> to vector<8x32xi32>
    %46 = arith.sitofp %45 : vector<8x32xi32> to vector<8x32xf32>
    %c0_28 = arith.constant 0 : index
    %c0_29 = arith.constant 0 : index
    %47 = vector.load %arg3[%c0_28, %c0_29] : memref<8x32xf32, #tpu.memory_space<vmem>>, vector<8x32xf32>
    %cst_30 = arith.constant 5.000000e-01 : f32
    %48 = vector.broadcast %cst_30 : f32 to vector<8x32xf32>
    %49 = arith.mulf %48, %38 : vector<8x32xf32>
    %50 = math.exp %49 : vector<8x32xf32>
    %51 = arith.mulf %47, %50 : vector<8x32xf32>
    %52 = arith.addf %51, %37 : vector<8x32xf32>
    %53 = arith.addf %52, %46 : vector<8x32xf32>
    %c0_31 = arith.constant 0 : index
    %c0_32 = arith.constant 0 : index
    %54 = vector.load %arg13[%c0_31, %c0_32] : memref<32x512xbf16, #tpu.memory_space<vmem>>, vector<32x512xbf16>
    %55 = arith.truncf %53 : vector<8x32xf32> to vector<8x32xbf16>
    %cst_33 = arith.constant dense<0.000000e+00> : vector<8x512xf32>
    %56 = tpu.matmul %55, %54, %cst_33 {dimension_numbers = #tpu.dot_dimension_numbers<[1], [0], [0], [1], [0, 0, 1, 1], [], []>} : vector<8x32xbf16>, vector<32x512xbf16>, vector<8x512xf32> -> vector<8x512xf32>
    %c0_34 = arith.constant 0 : index
    %c0_35 = arith.constant 0 : index
    %57 = vector.load %arg14[%c0_34, %c0_35] : memref<1x512xf32, #tpu.memory_space<vmem>>, vector<1x512xf32>
    %58 = vector.broadcast %57 : vector<1x512xf32> to vector<8x512xf32>
    %59 = arith.addf %56, %58 : vector<8x512xf32>
    %cst_36 = arith.constant 0.000000e+00 : f32
    %60 = vector.broadcast %cst_36 : f32 to vector<8x512xf32>
    %61 = arith.maximumf %59, %60 : vector<8x512xf32>
    %c0_37 = arith.constant 0 : index
    %c0_38 = arith.constant 0 : index
    %62 = vector.load %arg15[%c0_37, %c0_38] : memref<512x512xbf16, #tpu.memory_space<vmem>>, vector<512x512xbf16>
    %63 = arith.truncf %61 : vector<8x512xf32> to vector<8x512xbf16>
    %cst_39 = arith.constant dense<0.000000e+00> : vector<8x512xf32>
    %64 = tpu.matmul %63, %62, %cst_39 {dimension_numbers = #tpu.dot_dimension_numbers<[1], [0], [0], [1], [0, 0, 1, 1], [], []>} : vector<8x512xbf16>, vector<512x512xbf16>, vector<8x512xf32> -> vector<8x512xf32>
    %c0_40 = arith.constant 0 : index
    %c0_41 = arith.constant 0 : index
    %65 = vector.load %arg16[%c0_40, %c0_41] : memref<1x512xf32, #tpu.memory_space<vmem>>, vector<1x512xf32>
    %66 = vector.broadcast %65 : vector<1x512xf32> to vector<8x512xf32>
    %67 = arith.addf %64, %66 : vector<8x512xf32>
    %cst_42 = arith.constant 0.000000e+00 : f32
    %68 = vector.broadcast %cst_42 : f32 to vector<8x512xf32>
    %69 = arith.maximumf %67, %68 : vector<8x512xf32>
    %c0_43 = arith.constant 0 : index
    %c0_44 = arith.constant 0 : index
    %70 = vector.load %arg17[%c0_43, %c0_44] : memref<512x256xbf16, #tpu.memory_space<vmem>>, vector<512x256xbf16>
    %71 = arith.truncf %69 : vector<8x512xf32> to vector<8x512xbf16>
    %cst_45 = arith.constant dense<0.000000e+00> : vector<8x256xf32>
    %72 = tpu.matmul %71, %70, %cst_45 {dimension_numbers = #tpu.dot_dimension_numbers<[1], [0], [0], [1], [0, 0, 1, 1], [], []>} : vector<8x512xbf16>, vector<512x256xbf16>, vector<8x256xf32> -> vector<8x256xf32>
    %c0_46 = arith.constant 0 : index
    %c0_47 = arith.constant 0 : index
    %73 = vector.load %arg18[%c0_46, %c0_47] : memref<1x256xf32, #tpu.memory_space<vmem>>, vector<1x256xf32>
    %74 = vector.broadcast %73 : vector<1x256xf32> to vector<8x256xf32>
    %75 = arith.addf %72, %74 : vector<8x256xf32>
    %c0_48 = arith.constant 0 : index
    %c0_49 = arith.constant 0 : index
    %76 = vector.load %arg19[%c0_48, %c0_49] : memref<8x256xf32, #tpu.memory_space<vmem>>, vector<8x256xf32>
    tpu.vector_store %arg19[%c0_48, %c0_49], %75 {strides = array<i32>} : memref<8x256xf32, #tpu.memory_space<vmem>>, vector<8x256xf32>,
    return
  }
  func.func @transform_0(%arg0: i32) -> (i32, i32) {
    %c0_i32 = arith.constant 0 : i32
    %c0_i32_0 = arith.constant 0 : i32
    return %arg0, %c0_i32 : i32, i32
  }
  func.func @transform_1(%arg0: i32) -> (i32, i32) {
    %c0_i32 = arith.constant 0 : i32
    %c0_i32_0 = arith.constant 0 : i32
    return %arg0, %c0_i32 : i32, i32
  }
  func.func @transform_2(%arg0: i32) -> (i32, i32) {
    %c0_i32 = arith.constant 0 : i32
    %c0_i32_0 = arith.constant 0 : i32
    return %arg0, %c0_i32 : i32, i32
  }
  func.func @transform_3(%arg0: i32) -> (i32, i32) {
    %c0_i32 = arith.constant 0 : i32
    %c0_i32_0 = arith.constant 0 : i32
    %c0_i32_1 = arith.constant 0 : i32
    return %c0_i32, %c0_i32_0 : i32, i32
  }
  func.func @transform_4(%arg0: i32) -> (i32, i32) {
    %c0_i32 = arith.constant 0 : i32
    %c0_i32_0 = arith.constant 0 : i32
    %c0_i32_1 = arith.constant 0 : i32
    return %c0_i32, %c0_i32_0 : i32, i32
  }
  func.func @transform_5(%arg0: i32) -> (i32, i32) {
    %c0_i32 = arith.constant 0 : i32
    %c0_i32_0 = arith.constant 0 : i32
    %c0_i32_1 = arith.constant 0 : i32
    return %c0_i32, %c0_i32_0 : i32, i32
  }
  func.func @transform_6(%arg0: i32) -> (i32, i32) {
    %c0_i32 = arith.constant 0 : i32
    %c0_i32_0 = arith.constant 0 : i32
    %c0_i32_1 = arith.constant 0 : i32
    return %c0_i32, %c0_i32_0 : i32, i32
  }
  func.func @transform_7(%arg0: i32) -> (i32, i32) {
    %c0_i32 = arith.constant 0 : i32
    %c0_i32_0 = arith.constant 0 : i32
    %c0_i32_1 = arith.constant 0 : i32
    return %c0_i32, %c0_i32_0 : i32, i32
  }
  func.func @transform_8(%arg0: i32) -> (i32, i32) {
    %c0_i32 = arith.constant 0 : i32
    %c0_i32_0 = arith.constant 0 : i32
    %c0_i32_1 = arith.constant 0 : i32
    return %c0_i32, %c0_i32_0 : i32, i32
  }
  func.func @transform_9(%arg0: i32) -> (i32, i32) {
    %c0_i32 = arith.constant 0 : i32
    %c0_i32_0 = arith.constant 0 : i32
    %c0_i32_1 = arith.constant 0 : i32
    return %c0_i32, %c0_i32_0 : i32, i32
  }
  func.func @transform_10(%arg0: i32) -> (i32, i32) {
    %c0_i32 = arith.constant 0 : i32
    %c0_i32_0 = arith.constant 0 : i32
    %c0_i32_1 = arith.constant 0 : i32
    return %c0_i32, %c0_i32_0 : i32, i32
  }
  func.func @transform_11(%arg0: i32) -> (i32, i32) {
    %c0_i32 = arith.constant 0 : i32
    %c0_i32_0 = arith.constant 0 : i32
    %c0_i32_1 = arith.constant 0 : i32
    return %c0_i32, %c0_i32_0 : i32, i32
  }
  func.func @transform_12(%arg0: i32) -> (i32, i32) {
    %c0_i32 = arith.constant 0 : i32
    %c0_i32_0 = arith.constant 0 : i32
    %c0_i32_1 = arith.constant 0 : i32
    return %c0_i32, %c0_i32_0 : i32, i32
  }
  func.func @transform_13(%arg0: i32) -> (i32, i32) {
    %c0_i32 = arith.constant 0 : i32
    %c0_i32_0 = arith.constant 0 : i32
    %c0_i32_1 = arith.constant 0 : i32
    return %c0_i32, %c0_i32_0 : i32, i32
  }
  func.func @transform_14(%arg0: i32) -> (i32, i32) {
    %c0_i32 = arith.constant 0 : i32
    %c0_i32_0 = arith.constant 0 : i32
    %c0_i32_1 = arith.constant 0 : i32
    return %c0_i32, %c0_i32_0 : i32, i32
  }
  func.func @transform_15(%arg0: i32) -> (i32, i32) {
    %c0_i32 = arith.constant 0 : i32
    %c0_i32_0 = arith.constant 0 : i32
    %c0_i32_1 = arith.constant 0 : i32
    return %c0_i32, %c0_i32_0 : i32, i32
  }
  func.func @transform_16(%arg0: i32) -> (i32, i32) {
    %c0_i32 = arith.constant 0 : i32
    %c0_i32_0 = arith.constant 0 : i32
    %c0_i32_1 = arith.constant 0 : i32
    return %c0_i32, %c0_i32_0 : i32, i32
  }
  func.func @transform_17(%arg0: i32) -> (i32, i32) {
    %c0_i32 = arith.constant 0 : i32
    %c0_i32_0 = arith.constant 0 : i32
    %c0_i32_1 = arith.constant 0 : i32
    return %c0_i32, %c0_i32_0 : i32, i32
  }
  func.func @transform_18(%arg0: i32) -> (i32, i32) {
    %c0_i32 = arith.constant 0 : i32
    %c0_i32_0 = arith.constant 0 : i32
    return %arg0, %c0_i32 : i32, i32
  }
}

</mosaic_0001>

<bundles_post_ra>
// kernel: pp_forward.1
= control target key start
LH: loop header
LB: loop body
LE: loop exit
PB: predicated region body
PF: predicated region fallthrough
CT: control target
= control target key end

     0   :  { %s5483_s0 = inlined_call_operand.vmem [shape: s32[8,1], index: 0, kind: input, shape index: {}]   ;;  %s5484_s1 = inlined_call_operand.vmem [shape: f32[8,26], index: 1, kind: input, shape index: {}]   ;;  %s5485_s2 = inlined_call_operand.vmem [shape: f32[8,32], index: 2, kind: input, shape index: {}]   ;;  %s5486_s3 = inlined_call_operand.vmem [shape: bf16[26,384], index: 3, kind: input, shape index: {}]   ;;  %s5487_s4 = inlined_call_operand.vmem [shape: f32[1,384], index: 4, kind: input, shape index: {}]   ;;  %s5488_s5 = inlined_call_operand.vmem [shape: bf16[128,128], index: 5, kind: input, shape index: {}]   ;;  %s5489_s6 = inlined_call_operand.vmem [shape: f32[1,128], index: 6, kind: input, shape index: {}]   ;;  %s5490_s7 = inlined_call_operand.vmem [shape: bf16[256,256], index: 7, kind: input, shape index: {}]   ;;  %s5491_s8 = inlined_call_operand.vmem [shape: f32[1,256], index: 8, kind: input, shape index: {}]   ;;  %s5492_s9 = inlined_call_operand.vmem [shape: bf16[128,64], index: 9, kind: input, shape index: {}]   ;;  %s5493_s10 = inlined_call_operand.vmem [shape: bf16[256,64], index: 10, kind: input, shape index: {}]   ;;  %s5494_s11 = inlined_call_operand.vmem [shape: f32[1,64], index: 11, kind: input, shape index: {}]   ;;  %s5495_s12 = inlined_call_operand.vmem [shape: bf16[32,512], index: 12, kind: input, shape index: {}]   ;;  %s5496_s13 = inlined_call_operand.vmem [shape: f32[1,512], index: 13, kind: input, shape index: {}]   ;;  %s5497_s14 = inlined_call_operand.vmem [shape: bf16[512,512], index: 14, kind: input, shape index: {}]   ;;  %s5498_s15 = inlined_call_operand.vmem [shape: f32[1,512], index: 15, kind: input, shape index: {}]   ;;  %s5499_s16 = inlined_call_operand.vmem [shape: bf16[512,256], index: 16, kind: input, shape index: {}]   ;;  %s5500_s17 = inlined_call_operand.vmem [shape: f32[1,256], index: 17, kind: input, shape index: {}]   ;;  %s5501_s18 = inlined_call_operand.hbm [shape: f32[8,256], index: 18, kind: output, shape index: {}]  }
   0x1   :  { %5502 = sst [smem:[#allocation5_spill]] %s5483_s0 }
   0x2   :  { %5503 = sst [smem:[#allocation6_spill]] %s5484_s1 }
   0x3   :  { %5504 = sst [smem:[#allocation7_spill]] %s5485_s2 }
   0x4   :  { %v2404_v0 = vld [vmem:[%s5486_s3 + $0x18] sm:$0xf]  ;;  %v3482_v1 = vld [vmem:[%s5486_s3 + $0x20] sm:$0x10]  ;;  %vm112_vm0 = vcmask 1044480   ;;  %s5505_s20 = sld [smem:[#allocation6_spill]] }
   0x5   :  { %v2405_v2 = vor.u32 %v3482_v1, %v2404_v0  ;;  %v2412_v3 = vld [vmem:[%s5486_s3 + $0x20] sm:$0xf]  ;;  %v3483_v4 = vld [vmem:[%s5486_s3 + $0x28] sm:$0x10]  ;;  %v3481_v8 = vld [vmem:[%s5486_s3 + $0x1c] sm:$0xf] }
   0x6   :  { %v2392_v5 = vld [vmem:[%s5486_s3] sm:$0xf]  ;;  %v2413_v6 = vor.u32 %v3483_v4, %v2412_v3  ;;  %v3479_v7 = vld [vmem:[%s5486_s3 + $0x8] sm:$0xf0]  ;;  %v2406_v9 = vld [vmem:[%s5486_s3 + $0x24] sm:$0x10] }
   0x7   :  { %v114_v10 = vsel %vm112_vm0, %v2405_v2, 0  ;;  %v2409_v11 = vor.u32 %v3481_v8, %v2406_v9  ;;  %v2400_v12 = vld [vmem:[%s5486_s3 + $0x8] sm:$0xf]  ;;  %v3480_v13 = vld [vmem:[%s5486_s3 + $0x10] sm:$0xf0]  ;;  %v2393_v16 = vor.u32 %v3479_v7, %v2392_v5  ;;  %v3491_v19 = vld [vmem:[%s5488_s5 + $0x38] sm:$0xff] }
   0x8   :  { %128 = vmatpush.bf16.msra.mxu0 %v114_v10  ;;  %v120_v15 = vsel %vm112_vm0, %v2413_v6, 0  ;;  %v3478_v17 = vld [vmem:[%s5486_s3 + $0x4] sm:$0xf]  ;;  %v2394_v18 = vld [vmem:[%s5486_s3 + $0xc] sm:$0xf0]  ;;  %v2401_v21 = vor.u32 %v3480_v13, %v2400_v12  ;;  %233 = vmatpush.bf16.msra.mxu3 %v3491_v19  ;;  %vm108_vm1 = vcmask 211968  }
   0x9   :  { %154 = vmatpush.bf16.msra.mxu2 %v120_v15  ;;  %v117_v20 = vsel %vm112_vm0, %v2409_v11, 0  ;;  %v2397_v22 = vor.u32 %v3478_v17, %v2394_v18  ;;  %v3490_v23 = vld [vmem:[%s5488_s5 + $0x30] sm:$0xff]  ;;  %v3507_v25 = vld [vmem:[%s5490_s7 + $0x74] sm:$0xf0]  ;;  %v2509_v29 = vld [vmem:[%s5490_s7 + $0x78] sm:$0xf0] }
   0xa   :  { %v61_v14 = vld [vmem:[%s5505_s20] sm:$0xff]  ;;  %141 = vmatpush.bf16.msra.mxu1 %v117_v20  ;;  %v2507_v24 = vld [vmem:[%s5490_s7 + $0x70] sm:$0xf]  ;;  %v3506_v28 = vld [vmem:[%s5490_s7 + $0x74] sm:$0xf] }
   0xb   :  { %v70_v26 = vpack.c.bf16 %v61_v14, %v61_v14  ;;  %v2508_v27 = vor.u32 %v3507_v25, %v2507_v24  ;;  %v2512_v30 = vor.u32 %v3506_v28, %v2509_v29  ;;  %v2571_v31 = vld [vmem:[%s5490_s7 + $0xf0] sm:$0xf]  ;;  %v3523_v32 = vld [vmem:[%s5490_s7 + $0xf4] sm:$0xf0]  ;;  %v2499_v33 = vld [vmem:[%s5490_s7 + $0x60] sm:$0xf] }
   0xc   :  { %129 = vmatpush.bf16.msra.mxu0 %v2393_v16  ;;  %v2572_v34 = vor.u32 %v3523_v32, %v2571_v31  ;;  %v3505_v35 = vld [vmem:[%s5490_s7 + $0x64] sm:$0xf0]  ;;  %v3504_v36 = vld [vmem:[%s5490_s7 + $0x64] sm:$0xf]  ;;  %v2501_v37 = vld [vmem:[%s5490_s7 + $0x68] sm:$0xf0]  ;;  %234 = vmatpush.bf16.msra.mxu3 %v3490_v23 }
   0xd   :  { %155 = vmatpush.bf16.msra.mxu2 %v2401_v21  ;;  %v3489_v38 = vld [vmem:[%s5488_s5 + $0x28] sm:$0xff]  ;;  %v2500_v39 = vor.u32 %v3505_v35, %v2499_v33  ;;  %v2563_v40 = vld [vmem:[%s5490_s7 + $0xe0] sm:$0xf]  ;;  %v2504_v42 = vor.u32 %v3504_v36, %v2501_v37  ;;  %v2491_v43 = vld [vmem:[%s5490_s7 + $0x50] sm:$0xf] }
   0xe   :  { %142 = vmatpush.bf16.msra.mxu1 %v2397_v22  ;;  %v3521_v41 = vld [vmem:[%s5490_s7 + $0xe4] sm:$0xf0]  ;;  %v3503_v44 = vld [vmem:[%s5490_s7 + $0x54] sm:$0xf0]  ;;  %v3502_v46 = vld [vmem:[%s5490_s7 + $0x54] sm:$0xf] }
   0xf   :  { %2414 = vmatmul.msk.bf16.vlgmr.msra.gmra.mxu0 %vm108_vm1, %v70_v26  ;;  %v2564_v45 = vor.u32 %v3521_v41, %v2563_v40  ;;  %v2493_v47 = vld [vmem:[%s5490_s7 + $0x58] sm:$0xf0]  ;;  %v2492_v48 = vor.u32 %v3503_v44, %v2491_v43  ;;  %v2555_v49 = vld [vmem:[%s5490_s7 + $0xd0] sm:$0xf]  ;;  %v3519_v50 = vld [vmem:[%s5490_s7 + $0xd4] sm:$0xf0] }
  0x10   :  { %447 = vmatpush.bf16.msrb.mxu0 %v2508_v27  ;;  %2416 = vmatmul.msk.bf16.vlgmr.msra.gmra.mxu2 %vm108_vm1, %v70_v26  ;;  %v3488_v51 = vld [vmem:[%s5488_s5 + $0x20] sm:$0xff]  ;;  %v3501_v53 = vld [vmem:[%s5490_s7 + $0x44] sm:$0xf0]  ;;  %v2496_v54 = vor.u32 %v3502_v46, %v2493_v47  ;;  %v3487_v55 = vld [vmem:[%s5488_s5 + $0x18] sm:$0xff]  ;;  %v2556_v56 = vor.u32 %v3519_v50, %v2555_v49 }
  0x11   :  { %473 = vmatpush.bf16.msrb.mxu2 %v2512_v30  ;;  %2415 = vmatmul.msk.bf16.vlgmr.msra.gmra.mxu1 %vm108_vm1, %v70_v26  ;;  %v2483_v52 = vld [vmem:[%s5490_s7 + $0x40] sm:$0xf]  ;;  %v3500_v57 = vld [vmem:[%s5490_s7 + $0x44] sm:$0xf]  ;;  %v2485_v58 = vld [vmem:[%s5490_s7 + $0x48] sm:$0xf0] }
  0x12   :  { %460 = vmatpush.bf16.msrb.mxu1 %v2572_v34  ;;  %235 = vmatpush.bf16.msra.mxu3 %v3489_v38  ;;  %v2484_v59 = vor.u32 %v3501_v53, %v2483_v52  ;;  %v2547_v60 = vld [vmem:[%s5490_s7 + $0xc0] sm:$0xf]  ;;  %v3517_v61 = vld [vmem:[%s5490_s7 + $0xc4] sm:$0xf0]  ;;  %v2475_v62 = vld [vmem:[%s5490_s7 + $0x30] sm:$0xf]  ;;  %v2488_v0 = vor.u32 %v3500_v57, %v2485_v58 }
  0x13   :  { %v3499_v63 = vld [vmem:[%s5490_s7 + $0x34] sm:$0xf0] }
  0x14   :  { %448 = vmatpush.bf16.msrb.mxu0 %v2500_v39 }
  0x15   :  { %474 = vmatpush.bf16.msrb.mxu2 %v2504_v42 }
  0x16   :  { %461 = vmatpush.bf16.msrb.mxu1 %v2564_v45  ;;  %236 = vmatpush.bf16.msra.mxu3 %v3488_v51 }
  0x18   :  { %449 = vmatpush.bf16.msrb.mxu0 %v2492_v48 }
  0x19   :  { %475 = vmatpush.bf16.msrb.mxu2 %v2496_v54 }
  0x1a   :  { %23 = vsyncpa [#allocation3], 0  ;;  %462 = vmatpush.bf16.msrb.mxu1 %v2556_v56  ;;  %v2548_v1 = vor.u32 %v3517_v61, %v2547_v60  ;;  %v3498_v2 = vld [vmem:[%s5490_s7 + $0x34] sm:$0xf]  ;;  %v2477_v3 = vld [vmem:[%s5490_s7 + $0x38] sm:$0xf0]  ;;  %v2476_v4 = vor.u32 %v3499_v63, %v2475_v62  ;;  %237 = vmatpush.bf16.msra.mxu3 %v3487_v55 }
  0x1b   :  { %v3486_v5 = vld [vmem:[%s5488_s5 + $0x10] sm:$0xff]  ;;  %v2480_v6 = vor.u32 %v3498_v2, %v2477_v3  ;;  %v3485_v7 = vld [vmem:[%s5488_s5 + $0x8] sm:$0xff]  ;;  %v2573_v9 = vld [vmem:[%s5490_s7 + $0xf8] sm:$0xf0]  ;;  %s5506_s20 = sld [smem:[#allocation5_spill]]  ;;  %vm820_vm3 = vcmask 261120  }
  0x1c   :  { %450 = vmatpush.bf16.msrb.mxu0 %v2484_v59  ;;  %v3522_v8 = vld [vmem:[%s5490_s7 + $0xf4] sm:$0xf]  ;;  %v3484_v10 = vld [vmem:[%s5488_s5] sm:$0xff]  ;;  %v2565_v13 = vld [vmem:[%s5490_s7 + $0xe8] sm:$0xf0]  ;;  %s5507_s1 = sld [smem:[#allocation7_spill]] }
  0x1d   :  { %476 = vmatpush.bf16.msrb.mxu2 %v2488_v0  ;;  %v2576_v11 = vor.u32 %v3522_v8, %v2573_v9  ;;  %v3520_v12 = vld [vmem:[%s5490_s7 + $0xe4] sm:$0xf]  ;;  %v2539_v15 = vld [vmem:[%s5490_s7 + $0xb0] sm:$0xf]  ;;  %v3515_v16 = vld [vmem:[%s5490_s7 + $0xb4] sm:$0xf0] }
  0x1e   :  { %463 = vmatpush.bf16.msrb.mxu1 %v2548_v1  ;;  %238 = vmatpush.bf16.msra.mxu3 %v3486_v5  ;;  %v2568_v14 = vor.u32 %v3520_v12, %v2565_v13  ;;  %v3518_v17 = vld [vmem:[%s5490_s7 + $0xd4] sm:$0xf]  ;;  %v2540_v18 = vor.u32 %v3515_v16, %v2539_v15  ;;  %v2557_v19 = vld [vmem:[%s5490_s7 + $0xd8] sm:$0xf0]  ;;  %v2467_v21 = vld [vmem:[%s5490_s7 + $0x20] sm:$0xf] }
  0x1f   :  { %v2560_v20 = vor.u32 %v3518_v17, %v2557_v19  ;;  %v3497_v22 = vld [vmem:[%s5490_s7 + $0x24] sm:$0xf0]  ;;  %v3496_v23 = vld [vmem:[%s5490_s7 + $0x24] sm:$0xf]  ;;  %v2469_v25 = vld [vmem:[%s5490_s7 + $0x28] sm:$0xf0] }
  0x20   :  { %451 = vmatpush.bf16.msrb.mxu0 %v2476_v4  ;;  %v2468_v24 = vor.u32 %v3497_v22, %v2467_v21  ;;  %v2472_v26 = vor.u32 %v3496_v23, %v2469_v25  ;;  %v2531_v27 = vld [vmem:[%s5490_s7 + $0xa0] sm:$0xf]  ;;  %v3513_v28 = vld [vmem:[%s5490_s7 + $0xa4] sm:$0xf0]  ;;  %v3516_v29 = vld [vmem:[%s5490_s7 + $0xc4] sm:$0xf] }
  0x21   :  { %477 = vmatpush.bf16.msrb.mxu2 %v2480_v6  ;;  %v2532_v30 = vor.u32 %v3513_v28, %v2531_v27  ;;  %v2549_v31 = vld [vmem:[%s5490_s7 + $0xc8] sm:$0xf0]  ;;  %v2459_v33 = vld [vmem:[%s5490_s7 + $0x10] sm:$0xf]  ;;  %v3495_v34 = vld [vmem:[%s5490_s7 + $0x14] sm:$0xf0] }
  0x22   :  { %239 = vmatpush.bf16.msra.mxu3 %v3485_v7  ;;  %464 = vmatpush.bf16.msrb.mxu1 %v2540_v18  ;;  %v2552_v32 = vor.u32 %v3516_v29, %v2549_v31  ;;  %v2460_v35 = vor.u32 %v3495_v34, %v2459_v33  ;;  %v3494_v36 = vld [vmem:[%s5490_s7 + $0x14] sm:$0xf]  ;;  %v2461_v37 = vld [vmem:[%s5490_s7 + $0x18] sm:$0xf0]  ;;  %v2523_v39 = vld [vmem:[%s5490_s7 + $0x90] sm:$0xf] }
  0x23   :  { %v2464_v38 = vor.u32 %v3494_v36, %v2461_v37  ;;  %v3511_v40 = vld [vmem:[%s5490_s7 + $0x94] sm:$0xf0]  ;;  %v3514_v41 = vld [vmem:[%s5490_s7 + $0xb4] sm:$0xf]  ;;  %v2541_v43 = vld [vmem:[%s5490_s7 + $0xb8] sm:$0xf0] }
  0x24   :  { %452 = vmatpush.bf16.msrb.mxu0 %v2468_v24  ;;  %v2524_v42 = vor.u32 %v3511_v40, %v2523_v39  ;;  %v2544_v44 = vor.u32 %v3514_v41, %v2541_v43  ;;  %v2451_v45 = vld [vmem:[%s5490_s7] sm:$0xf]  ;;  %v3493_v46 = vld [vmem:[%s5490_s7 + $0x4] sm:$0xf0]  ;;  %v3492_v48 = vld [vmem:[%s5490_s7 + $0x4] sm:$0xf] }
  0x25   :  { %478 = vmatpush.bf16.msrb.mxu2 %v2472_v26  ;;  %v2452_v47 = vor.u32 %v3493_v46, %v2451_v45  ;;  %v2453_v49 = vld [vmem:[%s5490_s7 + $0x8] sm:$0xf0]  ;;  %v2515_v51 = vld [vmem:[%s5490_s7 + $0x80] sm:$0xf]  ;;  %v3509_v52 = vld [vmem:[%s5490_s7 + $0x84] sm:$0xf0] }
  0x26   :  { %240 = vmatpush.bf16.msra.mxu3 %v3484_v10  ;;  %465 = vmatpush.bf16.msrb.mxu1 %v2532_v30  ;;  %v2456_v50 = vor.u32 %v3492_v48, %v2453_v49  ;;  %v3512_v53 = vld [vmem:[%s5490_s7 + $0xa4] sm:$0xf]  ;;  %v2516_v54 = vor.u32 %v3509_v52, %v2515_v51  ;;  %v2533_v55 = vld [vmem:[%s5490_s7 + $0xa8] sm:$0xf0]  ;;  %v3510_v57 = vld [vmem:[%s5490_s7 + $0x94] sm:$0xf] }
  0x27   :  { %v2536_v56 = vor.u32 %v3512_v53, %v2533_v55  ;;  %v2525_v58 = vld [vmem:[%s5490_s7 + $0x98] sm:$0xf0]  ;;  %v3508_v60 = vld [vmem:[%s5490_s7 + $0x84] sm:$0xf]  ;;  %v2517_v61 = vld [vmem:[%s5490_s7 + $0x88] sm:$0xf0] }
  0x28   :  { %453 = vmatpush.bf16.msrb.mxu0 %v2460_v35  ;;  %v2528_v59 = vor.u32 %v3510_v57, %v2525_v58  ;;  %v2520_v62 = vor.u32 %v3508_v60, %v2517_v61  ;;  %v3531_v63 = vld [vmem:[%s5492_s9 + $0x38] sm:$0xff]  ;;  %v3530_v1 = vld [vmem:[%s5492_s9 + $0x30] sm:$0xff]  ;;  %v71_v4 = vld [vmem:[%s5487_s4] sm:$0x7]  ;;  %s3786_s4 = smov [#allocation2]   ;;  %s2381_s22 = sshll.u32 %s5501_s18, 4  ;;  %s2382_s22 = int_to_ptr.hbm [resolvable:$true] %s2381_s22 }
  0x29   :  { %479 = vmatpush.bf16.msrb.mxu2 %v2464_v38  ;;  %v3539_v0 = vld [vmem:[%s5493_s10 + $0x38] sm:$0xff]  ;;  %v3538_v2 = vld [vmem:[%s5493_s10 + $0x30] sm:$0xff]  ;;  %v73_v6 = vperm.slane %v71_v4, 0  ;;  %v3529_v7 = vld [vmem:[%s5492_s9 + $0x28] sm:$0xff]  ;;  %v74_v9 = vperm.slane %v71_v4, 1  ;;  %v75_v17 = vperm.slane %v71_v4, 2 }
  0x2a   :  { %486 = vmatpush.bf16.msrb.mxu3 %v2576_v11  ;;  %466 = vmatpush.bf16.msrb.mxu1 %v2524_v42  ;;  %v3547_v3 = vld [vmem:[%s5493_s10 + $0x78] sm:$0xff]  ;;  %v3546_v5 = vld [vmem:[%s5493_s10 + $0x70] sm:$0xff]  ;;  %v3537_v8 = vld [vmem:[%s5493_s10 + $0x28] sm:$0xff]  ;;  %v3783_v4 = vmov 0  }
  0x2b   :  { %v3528_v12 = vld [vmem:[%s5492_s9 + $0x20] sm:$0xff]  ;;  %v3535_v21 = vld [vmem:[%s5493_s10 + $0x18] sm:$0xff]  ;;  %v3526_v28 = vld [vmem:[%s5492_s9 + $0x10] sm:$0xff]  ;;  %3752 = vset.pattern.permute.xlu0 %v3783_v4 }
  0x2c   :  { %454 = vmatpush.bf16.msrb.mxu0 %v2452_v47  ;;  %v3536_v13 = vld [vmem:[%s5493_s10 + $0x20] sm:$0xff]  ;;  %v3534_v29 = vld [vmem:[%s5493_s10 + $0x10] sm:$0xff]  ;;  %v3525_v33 = vld [vmem:[%s5492_s9 + $0x8] sm:$0xff] }
  0x2d   :  { %480 = vmatpush.bf16.msrb.mxu2 %v2456_v50  ;;  %v3533_v34 = vld [vmem:[%s5493_s10 + $0x8] sm:$0xff]  ;;  %v3544_v35 = vld [vmem:[%s5493_s10 + $0x60] sm:$0xff]  ;;  %v3543_v38 = vld [vmem:[%s5493_s10 + $0x58] sm:$0xff] }
  0x2e   :  { %487 = vmatpush.bf16.msrb.mxu3 %v2568_v14  ;;  %467 = vmatpush.bf16.msrb.mxu1 %v2516_v54  ;;  %v3524_v36 = vld [vmem:[%s5492_s9] sm:$0xff]  ;;  %v3542_v39 = vld [vmem:[%s5493_s10 + $0x50] sm:$0xff]  ;;  %v3541_v40 = vld [vmem:[%s5493_s10 + $0x48] sm:$0xff] }
  0x2f   :  { %v3532_v37 = vld [vmem:[%s5493_s10] sm:$0xff] }
  0x30   :  { %648 = vmatpush.bf16.msra.mxu0 %v3539_v0  ;;  %v3540_v41 = vld [vmem:[%s5493_s10 + $0x40] sm:$0xff] }
  0x31   :  { %722 = vmatpush.bf16.msra.mxu2 %v3531_v63  ;;  %v281_v42 = vld [vmem:[%s5491_s8] sm:$0x3] }
  0x32   :  { %488 = vmatpush.bf16.msrb.mxu3 %v2560_v20  ;;  %661 = vmatpush.bf16.msra.mxu1 %v3547_v3  ;;  %v3527_v20 = vld [vmem:[%s5492_s9 + $0x18] sm:$0xff]  ;;  %v283_v43 = vperm.slane %v281_v42, 0  ;;  %v3753_v45 = vld [vmem:[%s5489_s6] ss:$0 sm:$0xff]  ;;  %v284_v58 = vperm.slane %v281_v42, 1 }
  0x33   :  { %v3192_v4 = vld [vmem:[%s5497_s14 + $0x3c0] sm:$0xf] }
  0x34   :  { %649 = vmatpush.bf16.msra.mxu0 %v3538_v2 }
  0x35   :  { %723 = vmatpush.bf16.msra.mxu2 %v3530_v1 }
  0x36   :  { %489 = vmatpush.bf16.msrb.mxu3 %v2552_v32  ;;  %662 = vmatpush.bf16.msra.mxu1 %v3546_v5  ;;  %v3545_v32 = vld [vmem:[%s5493_s10 + $0x68] sm:$0xff]  ;;  %s3784_s10 = smov 96  }
  0x38   :  { %650 = vmatpush.bf16.msra.mxu0 %v3537_v8 }
  0x39   :  { %724 = vmatpush.bf16.msra.mxu2 %v3529_v7 }
  0x3a   :  { %490 = vmatpush.bf16.msrb.mxu3 %v2544_v44  ;;  %663 = vmatpush.bf16.msra.mxu1 %v3545_v32  ;;  %v3550_v32 = vld [vmem:[%s5495_s12 + $0xc] sm:$0xf0] }
  0x3c   :  { %651 = vmatpush.bf16.msra.mxu0 %v3536_v13 }
  0x3d   :  { %725 = vmatpush.bf16.msra.mxu2 %v3528_v12 }
  0x3e   :  { %491 = vmatpush.bf16.msrb.mxu3 %v2536_v56  ;;  %664 = vmatpush.bf16.msra.mxu1 %v3544_v35  ;;  %v2678_v35 = vld [vmem:[%s5495_s12 + $0x10] sm:$0xf0] }
  0x40   :  { %652 = vmatpush.bf16.msra.mxu0 %v3535_v21  ;;  %v3552_v21 = vld [vmem:[%s5495_s12 + $0x24] sm:$0xf] }
  0x41   :  { %726 = vmatpush.bf16.msra.mxu2 %v3527_v20  ;;  %v3554_v20 = vld [vmem:[%s5495_s12 + $0x2c] sm:$0xf0] }
  0x42   :  { %492 = vmatpush.bf16.msrb.mxu3 %v2528_v59  ;;  %665 = vmatpush.bf16.msra.mxu1 %v3543_v38 }
  0x44   :  { %653 = vmatpush.bf16.msra.mxu0 %v3534_v29  ;;  %v2702_v29 = vld [vmem:[%s5495_s12 + $0x38] sm:$0xf0] }
  0x45   :  { %727 = vmatpush.bf16.msra.mxu2 %v3526_v28  ;;  %v3553_v28 = vld [vmem:[%s5495_s12 + $0x2c] sm:$0xf] }
  0x46   :  { %493 = vmatpush.bf16.msrb.mxu3 %v2520_v62  ;;  %666 = vmatpush.bf16.msra.mxu1 %v3542_v39 }
  0x48   :  { %654 = vmatpush.bf16.msra.mxu0 %v3533_v34 }
  0x49   :  { %728 = vmatpush.bf16.msra.mxu2 %v3525_v33  ;;  %v3548_v33 = vld [vmem:[%s5495_s12 + $0x4] sm:$0xf] }
  0x4a   :  { %667 = vmatpush.bf16.msra.mxu1 %v3541_v40  ;;  %v2681_v38 = vor.u32 %v3548_v33, %v2678_v35  ;;  %v3549_v40 = vld [vmem:[%s5495_s12 + $0xc] sm:$0xf]  ;;  %v3144_v35 = vld [vmem:[%s5497_s14 + $0x360] sm:$0xf] }
  0x4c   :  { %655 = vmatpush.bf16.msra.mxu0 %v3532_v37  ;;  %v3551_v37 = vld [vmem:[%s5495_s12 + $0x14] sm:$0xf0] }
  0x4d   :  { %729 = vmatpush.bf16.msra.mxu2 %v3524_v36  ;;  %v2684_v36 = vld [vmem:[%s5495_s12 + $0x8] sm:$0xf] }
  0x4e   :  { %668 = vmatpush.bf16.msra.mxu1 %v3540_v41  ;;  %v2685_v39 = vor.u32 %v3551_v37, %v2684_v36  ;;  %v2686_v41 = vld [vmem:[%s5495_s12 + $0x18] sm:$0xf0]  ;;  %v3666_v36 = vld [vmem:[%s5497_s14 + $0x36c] sm:$0xf0] }
  0x4f   :  { %v2689_v42 = vor.u32 %v3549_v40, %v2686_v41  ;;  %v3598_v40 = vld [vmem:[%s5497_s14 + $0x14c] sm:$0xf0]  ;;  %v740_v41 = vlaneseq }
  0x8c   :  { %v131_v10 = vpop.f32.mrf.mxu0 }
  0x8d   :  { %v132_v11 = vadd.f32 %v131_v10, %v73_v6  ;;  %v3754_v10 = vld [vmem:[%s5494_s11] ss:$0 sm:$0xff] }
  0x8e   :  { %v144_v14 = vpop.f32.mrf.mxu1 }
  0x8f   :  { %v161_v15 = vmax.f32 %v132_v11, 0.0  ;;  %v145_v16 = vadd.f32 %v144_v14, %v74_v9 }
  0x91   :  { %v162_v18 = vmax.f32 %v145_v16, 0.0  ;;  %v180_v19 = vpack.c.bf16 %v161_v15, %v161_v15 }
  0x93   :  { %v279_v22 = vpack.c.bf16 %v162_v18, %v162_v18  ;;  %241 = vmatmul.bf16.vlgmr.msra.gmra.mxu3 %v180_v19  ;;  %v157_v23 = vpop.f32.mrf.mxu2  ;;  %v2692_v19 = vld [vmem:[%s5495_s12 + $0x20] sm:$0xf] }
  0x94   :  { %v133_v24 = vpop.f32.mrf.mxu0  ;;  %v158_v25 = vadd.f32 %v157_v23, %v75_v17  ;;  %v742_v17 = vld [vmem:[%s5506_s20] sm:$0xff]  ;;  %v2694_v23 = vld [vmem:[%s5495_s12 + $0x30] sm:$0xf0] }
  0x95   :  { %455 = vmatmul.bf16.vlgmr.msrb.gmra.mxu0 %v279_v22  ;;  %481 = vmatmul.bf16.vlgmr.msrb.gmra.mxu2 %v279_v22  ;;  %v743_v18 = vadd.s32 16, %v742_v17  ;;  %v2693_v22 = vor.u32 %v3554_v20, %v2692_v19  ;;  %v2700_v24 = vld [vmem:[%s5495_s12 + $0x28] sm:$0xf]  ;;  %v3674_v17 = vld [vmem:[%s5497_s14 + $0x3ac] sm:$0xf0] }
  0x96   :  { %v163_v26 = vmax.f32 %v158_v25, 0.0  ;;  %v146_v27 = vpop.f32.mrf.mxu1  ;;  %v3555_v25 = vld [vmem:[%s5495_s12 + $0x34] sm:$0xf0]  ;;  %v2776_v20 = vld [vmem:[%s5497_s14 + $0x80] sm:$0xf] }
  0x97   :  { %v2701_v27 = vor.u32 %v3555_v25, %v2700_v24  ;;  %830 = vmatpush.bf16.msra.mxu3 %v2693_v22  ;;  %v3574_v22 = vld [vmem:[%s5497_s14 + $0x8c] sm:$0xf0] }
  0x98   :  { %v280_v30 = vpack.c.bf16 %v163_v26, %v163_v26  ;;  %v2697_v26 = vor.u32 %v3552_v21, %v2694_v23  ;;  %v3160_v23 = vld [vmem:[%s5497_s14 + $0x380] sm:$0xf]  ;;  %v3670_v24 = vld [vmem:[%s5497_s14 + $0x38c] sm:$0xf0] }
  0x9a   :  { %468 = vmatmul.bf16.vlgmr.msrb.gmra.mxu1 %v280_v30  ;;  %843 = vmatpush.bf16.msrb.mxu0 %v2697_v26  ;;  %v2888_v26 = vld [vmem:[%s5497_s14 + $0x160] sm:$0xf] }
  0x9b   :  { %v159_v31 = vpop.f32.mrf.mxu2  ;;  %856 = vmatpush.bf16.msrb.mxu1 %v2701_v27  ;;  %v3602_v27 = vld [vmem:[%s5497_s14 + $0x16c] sm:$0xf0] }
  0x9c   :  { %v2676_v31 = vld [vmem:[%s5495_s12] sm:$0xf]  ;;  %v2889_v33 = vor.u32 %v3602_v27, %v2888_v26  ;;  %v2826_v26 = vld [vmem:[%s5497_s14 + $0xf0] sm:$0xf0]  ;;  %v3680_v27 = vld [vmem:[%s5497_s14 + $0x3e4] sm:$0xf] }
  0x9d   :  { %v2677_v34 = vor.u32 %v3550_v32, %v2676_v31  ;;  %v3161_v31 = vor.u32 %v3670_v24, %v3160_v23  ;;  %v2760_v32 = vld [vmem:[%s5497_s14 + $0x60] sm:$0xf] }
  0x9e   :  { %844 = vmatpush.bf16.msrb.mxu0 %v2681_v38 }
  0x9f   :  { %831 = vmatpush.bf16.msra.mxu3 %v2677_v34  ;;  %857 = vmatpush.bf16.msrb.mxu1 %v2685_v39  ;;  %v3570_v34 = vld [vmem:[%s5497_s14 + $0x6c] sm:$0xf0]  ;;  %v2872_v39 = vld [vmem:[%s5497_s14 + $0x140] sm:$0xf] }
  0xa3   :  { %494 = vmatmul.bf16.vlgmr.msrb.gmra.mxu3 %v280_v30  ;;  %v2705_v30 = vor.u32 %v3553_v28, %v2702_v29  ;;  %v3016_v28 = vld [vmem:[%s5497_s14 + $0x260] sm:$0xf]  ;;  %v3634_v29 = vld [vmem:[%s5497_s14 + $0x26c] sm:$0xf0] }
  0xa4   :  { %v3017_v38 = vor.u32 %v3634_v29, %v3016_v28  ;;  %v3210_v28 = vld [vmem:[%s5497_s14 + $0x3f0] sm:$0xf0] }
  0xa5   :  { %869 = vmatpush.bf16.msrb.mxu2 %v2705_v30  ;;  %v2777_v30 = vor.u32 %v3574_v22, %v2776_v20  ;;  %v3096_v20 = vld [vmem:[%s5497_s14 + $0x300] sm:$0xf]  ;;  %v3584_v22 = vld [vmem:[%s5497_s14 + $0xe4] sm:$0xf] }
  0xa9   :  { %870 = vmatpush.bf16.msrb.mxu2 %v2689_v42  ;;  %v3000_v42 = vld [vmem:[%s5497_s14 + $0x240] sm:$0xf] }
 0x112   :  { %v456_v44 = vpop.f32.mrf.mxu0 }
 0x113   :  { %v457_v46 = vadd.f32 %v456_v44, %v283_v43  ;;  %v2952_v43 = vld [vmem:[%s5497_s14 + $0x1e0] sm:$0xf]  ;;  %v3618_v44 = vld [vmem:[%s5497_s14 + $0x1ec] sm:$0xf0] }
 0x116   :  { %v242_v47 = vpop.f32.mrf.mxu3 }
 0x117   :  { %v243_v48 = vadd.f32 %v3753_v45, %v242_v47  ;;  %v469_v49 = vpop.f32.mrf.mxu1  ;;  %v3080_v45 = vld [vmem:[%s5497_s14 + $0x2e0] sm:$0xf]  ;;  %v3650_v47 = vld [vmem:[%s5497_s14 + $0x2ec] sm:$0xf0] }
 0x118   :  { %v470_v50 = vadd.f32 %v469_v49, %v457_v46  ;;  %v482_v51 = vpop.f32.mrf.mxu2  ;;  %v2953_v46 = vor.u32 %v3618_v44, %v2952_v43  ;;  %v3614_v49 = vld [vmem:[%s5497_s14 + $0x1cc] sm:$0xf0]  ;;  %v750_v44 = vld [vmem:[%s5507_s1] sm:$0xff] }
 0x119   :  { %v246_v52 = vmax.f32 %v243_v48, 0.0  ;;  %v483_v61 = vadd.f32 %v482_v51, %v284_v58  ;;  %v2936_v48 = vld [vmem:[%s5497_s14 + $0x1c0] sm:$0xf]  ;;  %v3630_v43 = vld [vmem:[%s5497_s14 + $0x24c] sm:$0xf0] }
 0x11a   :  { %v499_v53 = vmax.f32 %v470_v50, 0.0  ;;  %v458_v54 = vpop.f32.mrf.mxu0  ;;  %v3081_v50 = vor.u32 %v3650_v47, %v3080_v45  ;;  %v3064_v51 = vld [vmem:[%s5497_s14 + $0x2c0] sm:$0xf]  ;;  %v2761_v45 = vor.u32 %v3570_v34, %v2760_v32  ;;  %v2938_v32 = vld [vmem:[%s5497_s14 + $0x1d0] sm:$0xf0] }
 0x11b   :  { %v517_v55 = vpack.c.bf16 %v246_v52, %v246_v52  ;;  %v3646_v52 = vld [vmem:[%s5497_s14 + $0x2cc] sm:$0xf0]  ;;  %v2937_v54 = vor.u32 %v3614_v49, %v2936_v48  ;;  %v2744_v47 = vld [vmem:[%s5497_s14 + $0x40] sm:$0xf]  ;;  %v2873_v48 = vor.u32 %v3598_v40, %v2872_v39  ;;  %v3066_v34 = vld [vmem:[%s5497_s14 + $0x2d0] sm:$0xf0] }
 0x11c   :  { %v550_v56 = vpack.c.bf16 %v499_v53, %v499_v53  ;;  %v2824_v53 = vld [vmem:[%s5497_s14 + $0xe0] sm:$0xf]  ;;  %v3065_v58 = vor.u32 %v3646_v52, %v3064_v51  ;;  %v3566_v49 = vld [vmem:[%s5497_s14 + $0x4c] sm:$0xf0]  ;;  %v3001_v52 = vor.u32 %v3630_v43, %v3000_v42  ;;  %v3580_v39 = vld [vmem:[%s5497_s14 + $0xc4] sm:$0xf] }
 0x11d   :  { %730 = vmatmul.bf16.vlgmr.msra.gmra.mxu2 %v517_v55  ;;  %v3586_v55 = vld [vmem:[%s5497_s14 + $0xec] sm:$0xf0]  ;;  %v2810_v40 = vld [vmem:[%s5497_s14 + $0xd0] sm:$0xf0] }
 0x11e   :  { %v244_v57 = vpop.f32.mrf.mxu3  ;;  %656 = vmatmul.bf16.vlgmr.msra.gmra.mxu0 %v550_v56  ;;  %v3208_v56 = vld [vmem:[%s5497_s14 + $0x3e0] sm:$0xf]  ;;  %v3662_v51 = vld [vmem:[%s5497_s14 + $0x34c] sm:$0xf0]  ;;  %v3194_v42 = vld [vmem:[%s5497_s14 + $0x3d0] sm:$0xf0] }
 0x11f   :  { %v471_v59 = vpop.f32.mrf.mxu1  ;;  %1675 = vmatpush.bf16.msra.mxu0 %v2953_v46  ;;  %v3682_v57 = vld [vmem:[%s5497_s14 + $0x3ec] sm:$0xf0]  ;;  %v3145_v46 = vor.u32 %v3666_v36, %v3144_v35 }
 0x120   :  { %v484_v60 = vpop.f32.mrf.mxu2  ;;  %v2825_v59 = vor.u32 %v3586_v55, %v2824_v53  ;;  %v2856_v53 = vld [vmem:[%s5497_s14 + $0x120] sm:$0xf] }
 0x121   :  { %v3209_v60 = vor.u32 %v3682_v57, %v3208_v56  ;;  %v741_v56 = vand.u32 127, %v740_v41  ;;  %v2984_v57 = vld [vmem:[%s5497_s14 + $0x220] sm:$0xf]  ;;  %v3676_v41 = vld [vmem:[%s5497_s14 + $0x3c4] sm:$0xf] }
 0x122   :  { %1662 = vmatpush.bf16.msrb.mxu3 %v2825_v59  ;;  %v2745_v59 = vor.u32 %v3566_v49, %v2744_v47  ;;  %v3640_v47 = vld [vmem:[%s5497_s14 + $0x2a4] sm:$0xf]  ;;  %v2813_v49 = vor.u32 %v3580_v39, %v2810_v40 }
 0x123   :  { %1701 = vmatpush.bf16.msra.mxu2 %v3209_v60  ;;  %1676 = vmatpush.bf16.msra.mxu0 %v2937_v54  ;;  %v3594_v54 = vld [vmem:[%s5497_s14 + $0x12c] sm:$0xf0]  ;;  %v3620_v39 = vld [vmem:[%s5497_s14 + $0x204] sm:$0xf] }
 0x126   :  { %v495_v62 = vpop.f32.mrf.mxu3 }
 0x127   :  { %v496_v63 = vadd.f32 %v495_v62, %v483_v61  ;;  %v2920_v61 = vld [vmem:[%s5497_s14 + $0x1a0] sm:$0xf]  ;;  %v3610_v62 = vld [vmem:[%s5497_s14 + $0x1ac] sm:$0xf0] }
 0x129   :  { %v500_v0 = vmax.f32 %v496_v63, 0.0  ;;  %v3048_v63 = vld [vmem:[%s5497_s14 + $0x2a0] sm:$0xf] }
 0x12b   :  { %v551_v1 = vpack.c.bf16 %v500_v0, %v500_v0  ;;  %v3642_v0 = vld [vmem:[%s5497_s14 + $0x2ac] sm:$0xf0] }
 0x12d   :  { %669 = vmatmul.bf16.vlgmr.msra.gmra.mxu1 %v551_v1  ;;  %v2808_v1 = vld [vmem:[%s5497_s14 + $0xc0] sm:$0xf] }
 0x12e   :  { %v497_v2 = vpop.f32.mrf.mxu3  ;;  %1688 = vmatpush.bf16.msra.mxu1 %v3081_v50  ;;  %v3128_v50 = vld [vmem:[%s5497_s14 + $0x340] sm:$0xf] }
 0x12f   :  { %v3582_v2 = vld [vmem:[%s5497_s14 + $0xcc] sm:$0xf0]  ;;  %v3129_v60 = vor.u32 %v3662_v51, %v3128_v50  ;;  %v3197_v50 = vor.u32 %v3676_v41, %v3194_v42  ;;  %v3576_v51 = vld [vmem:[%s5497_s14 + $0xa4] sm:$0xf]  ;;  %v2970_v41 = vld [vmem:[%s5497_s14 + $0x210] sm:$0xf0] }
 0x130   :  { %v2973_v42 = vor.u32 %v3620_v39, %v2970_v41  ;;  %v3200_v39 = vld [vmem:[%s5497_s14 + $0x3c8] sm:$0xf] }
 0x132   :  { %1689 = vmatpush.bf16.msra.mxu1 %v3065_v58  ;;  %v3626_v58 = vld [vmem:[%s5497_s14 + $0x22c] sm:$0xf0] }
 0x19b   :  { %v657_v3 = vpop.f32.mrf.mxu0 }
 0x1a0   :  { %v731_v5 = vpop.f32.mrf.mxu2 }
 0x1a3   :  { %v659_v6 = vpop.f32.mrf.mxu0 }
 0x1a4   :  { %v2921_v6 = vor.u32 %v3610_v62, %v2920_v61  ;;  %v2728_v61 = vld [vmem:[%s5497_s14 + $0x20] sm:$0xf]  ;;  %v2857_v62 = vor.u32 %v3594_v54, %v2856_v53  ;;  %v3672_v53 = vld [vmem:[%s5497_s14 + $0x3a4] sm:$0xf]  ;;  %v3178_v54 = vld [vmem:[%s5497_s14 + $0x3b0] sm:$0xf0] }
 0x1a6   :  { %1677 = vmatpush.bf16.msra.mxu0 %v2921_v6 }
 0x1a8   :  { %v733_v7 = vpop.f32.mrf.mxu2 }
 0x1aa   :  { %v670_v8 = vpop.f32.mrf.mxu1 }
 0x1ab   :  { %v671_v9 = vadd.f32 %v670_v8, %v657_v3  ;;  %v2809_v3 = vor.u32 %v3582_v2, %v2808_v1  ;;  %v2904_v8 = vld [vmem:[%s5497_s14 + $0x180] sm:$0xf]  ;;  %v3658_v1 = vld [vmem:[%s5497_s14 + $0x32c] sm:$0xf0] }
 0x1ad   :  { %v732_v11 = vadd.f32 %v731_v5, %v671_v9  ;;  %v3678_v5 = vld [vmem:[%s5497_s14 + $0x3cc] sm:$0xf0]  ;;  %1663 = vmatpush.bf16.msrb.mxu3 %v2809_v3  ;;  %v2985_v3 = vor.u32 %v3626_v58, %v2984_v57  ;;  %v3604_v57 = vld [vmem:[%s5497_s14 + $0x184] sm:$0xf]  ;;  %v2906_v58 = vld [vmem:[%s5497_s14 + $0x190] sm:$0xf0] }
 0x1ae   :  { %v3193_v7 = vor.u32 %v3678_v5, %v3192_v4  ;;  %v3606_v9 = vld [vmem:[%s5497_s14 + $0x18c] sm:$0xf0]  ;;  %v2840_v4 = vld [vmem:[%s5497_s14 + $0x100] sm:$0xf] }
 0x1af   :  { %v4227_v12 = vadd.f32 %v3754_v10, %v732_v11  ;;  %v3049_v10 = vor.u32 %v3642_v0, %v3048_v63  ;;  %v2792_v11 = vld [vmem:[%s5497_s14 + $0xa0] sm:$0xf]  ;;  %v2905_v21 = vor.u32 %v3606_v9, %v2904_v8  ;;  %v3562_v63 = vld [vmem:[%s5497_s14 + $0x2c] sm:$0xf0]  ;;  %v3616_v9 = vld [vmem:[%s5497_s14 + $0x1e4] sm:$0xf] }
 0x1b0   :  { %1702 = vmatpush.bf16.msra.mxu2 %v3193_v7  ;;  %v3112_v0 = vld [vmem:[%s5497_s14 + $0x320] sm:$0xf]  ;;  %v3590_v5 = vld [vmem:[%s5497_s14 + $0x10c] sm:$0xf0] }
 0x1b1   :  { %v751_v13 = vmul.f32 0.5, %v4227_v12  ;;  %1690 = vmatpush.bf16.msra.mxu1 %v3049_v10  ;;  %1678 = vmatpush.bf16.msra.mxu0 %v2905_v21  ;;  %v2968_v7 = vld [vmem:[%s5497_s14 + $0x200] sm:$0xf]  ;;  %v3622_v8 = vld [vmem:[%s5497_s14 + $0x20c] sm:$0xf0]  ;;  %v3785_v10 = vmov 0.0   ;;  %v2841_v24 = vor.u32 %v3590_v5, %v2840_v4 }
 0x1b2   :  { %v672_v14 = vpop.f32.mrf.mxu1  ;;  %v3654_v21 = vld [vmem:[%s5497_s14 + $0x30c] sm:$0xf0]  ;;  %v3600_v5 = vld [vmem:[%s5497_s14 + $0x164] sm:$0xf] }
 0x1b3   :  { %v752_v15 = vmul.f32 1.442695, %v751_v13  ;;  %v3578_v13 = vld [vmem:[%s5497_s14 + $0xac] sm:$0xf0]  ;;  %v3176_v14 = vld [vmem:[%s5497_s14 + $0x3a0] sm:$0xf]  ;;  %v3097_v36 = vor.u32 %v3654_v21, %v3096_v20 }
 0x1b4   :  { %v3177_v19 = vor.u32 %v3674_v17, %v3176_v14  ;;  %v2729_v14 = vor.u32 %v3562_v63, %v2728_v61  ;;  %v3082_v17 = vld [vmem:[%s5497_s14 + $0x2f0] sm:$0xf0]  ;;  %v3572_v63 = vld [vmem:[%s5497_s14 + $0x84] sm:$0xf] }
 0x1b5   :  { %3755 = vpow2.f32 %v752_v15  ;;  %v3032_v15 = vld [vmem:[%s5497_s14 + $0x280] sm:$0xf]  ;;  %1679 = vmatpush.bf16.msra.mxu0 %v2889_v33  ;;  %v3644_v33 = vld [vmem:[%s5497_s14 + $0x2c4] sm:$0xf]  ;;  %v2762_v20 = vld [vmem:[%s5497_s14 + $0x70] sm:$0xf0] }
 0x1b6   :  { %1703 = vmatpush.bf16.msra.mxu2 %v3177_v19  ;;  %v3558_v19 = vld [vmem:[%s5497_s14 + $0xc] sm:$0xf0]  ;;  %v3664_v21 = vld [vmem:[%s5497_s14 + $0x364] sm:$0xf] }
 0x1b9   :  { %1680 = vmatpush.bf16.msra.mxu0 %v2873_v48  ;;  %v3050_v48 = vld [vmem:[%s5497_s14 + $0x2b0] sm:$0xf0] }
 0x1ba   :  { %1704 = vmatpush.bf16.msra.mxu2 %v3161_v31  ;;  %v3612_v31 = vld [vmem:[%s5497_s14 + $0x1c4] sm:$0xf] }
 0x1bb   :  { %v3756_v16 = vpop.eup %3755  ;;  %v2941_v43 = vor.u32 %v3612_v31, %v2938_v32  ;;  %v3564_v31 = vld [vmem:[%s5497_s14 + $0x44] sm:$0xf]  ;;  %v2746_v32 = vld [vmem:[%s5497_s14 + $0x50] sm:$0xf0] }
 0x1bc   :  { %755 = vrot.lane.b32.xlu0 %v3756_v16, %s3784_s10  ;;  %v3638_v16 = vld [vmem:[%s5497_s14 + $0x28c] sm:$0xf0] }
 0x1bd   :  { %v3033_v25 = vor.u32 %v3638_v16, %v3032_v15  ;;  %v3113_v15 = vor.u32 %v3658_v1, %v3112_v0  ;;  %1681 = vmatpush.bf16.msra.mxu0 %v2857_v62  ;;  %v3181_v62 = vor.u32 %v3672_v53, %v3178_v54  ;;  %v2778_v0 = vld [vmem:[%s5497_s14 + $0x90] sm:$0xf0]  ;;  %v3668_v1 = vld [vmem:[%s5497_s14 + $0x384] sm:$0xf] }
 0x1be   :  { %1705 = vmatpush.bf16.msra.mxu2 %v3145_v46  ;;  %v2922_v46 = vld [vmem:[%s5497_s14 + $0x1b0] sm:$0xf0] }
 0x1bf   :  { %1691 = vmatpush.bf16.msra.mxu1 %v3033_v25  ;;  %v2969_v25 = vor.u32 %v3622_v8, %v2968_v7  ;;  %v3632_v7 = vld [vmem:[%s5497_s14 + $0x264] sm:$0xf]  ;;  %v3018_v8 = vld [vmem:[%s5497_s14 + $0x270] sm:$0xf0] }
 0x1c0   :  { %v3098_v53 = vld [vmem:[%s5497_s14 + $0x310] sm:$0xf0] }
 0x1c1   :  { %1682 = vmatpush.bf16.msra.mxu0 %v2841_v24 }
 0x1c2   :  { %1706 = vmatpush.bf16.msra.mxu2 %v3129_v60  ;;  %v3034_v60 = vld [vmem:[%s5497_s14 + $0x290] sm:$0xf0] }
 0x1c3   :  { %1692 = vmatpush.bf16.msra.mxu1 %v3017_v38  ;;  %v3213_v38 = vor.u32 %v3680_v27, %v3210_v28  ;;  %v3624_v28 = vld [vmem:[%s5497_s14 + $0x224] sm:$0xf] }
 0x1c4   :  { %745 = vperm.xlu0 %3752, %v743_v18   ;;  %v2793_v18 = vor.u32 %v3578_v13, %v2792_v11  ;;  %v3648_v13 = vld [vmem:[%s5497_s14 + $0x2e4] sm:$0xf] }
 0x1c6   :  { %1664 = vmatpush.bf16.msrb.mxu3 %v2793_v18  ;;  %v2712_v18 = vld [vmem:[%s5497_s14] sm:$0xf]  ;;  %1707 = vmatpush.bf16.msra.mxu2 %v3113_v15  ;;  %v3628_v15 = vld [vmem:[%s5497_s14 + $0x244] sm:$0xf] }
 0x1c7   :  { %1693 = vmatpush.bf16.msra.mxu1 %v3001_v52  ;;  %v2713_v35 = vor.u32 %v3558_v19, %v2712_v18  ;;  %v2794_v52 = vld [vmem:[%s5497_s14 + $0xb0] sm:$0xf0]  ;;  %v3568_v19 = vld [vmem:[%s5497_s14 + $0x64] sm:$0xf] }
 0x1c8   :  { %v2797_v61 = vor.u32 %v3576_v51, %v2794_v52  ;;  %v3652_v52 = vld [vmem:[%s5497_s14 + $0x304] sm:$0xf] }
 0x1c9   :  { %v3101_v54 = vor.u32 %v3652_v52, %v3098_v53  ;;  %v3184_v53 = vld [vmem:[%s5497_s14 + $0x3a8] sm:$0xf] }
 0x1ca   :  { %1665 = vmatpush.bf16.msrb.mxu3 %v2777_v30  ;;  %v3085_v30 = vor.u32 %v3648_v13, %v3082_v17  ;;  %1708 = vmatpush.bf16.msra.mxu2 %v3097_v36  ;;  %v3596_v13 = vld [vmem:[%s5497_s14 + $0x144] sm:$0xf] }
 0x1cb   :  { %1694 = vmatpush.bf16.msra.mxu1 %v2985_v3  ;;  %v2909_v3 = vor.u32 %v3604_v57, %v2906_v58 }
 0x1ce   :  { %1666 = vmatpush.bf16.msrb.mxu3 %v2761_v45  ;;  %v3608_v45 = vld [vmem:[%s5497_s14 + $0x1a4] sm:$0xf] }
 0x1cf   :  { %1695 = vmatpush.bf16.msra.mxu1 %v2969_v25  ;;  %v3592_v25 = vld [vmem:[%s5497_s14 + $0x124] sm:$0xf] }
 0x1d2   :  { %1667 = vmatpush.bf16.msrb.mxu3 %v2745_v59  ;;  %v3636_v59 = vld [vmem:[%s5497_s14 + $0x284] sm:$0xf] }
 0x1d3   :  { %v3037_v4 = vor.u32 %v3636_v59, %v3034_v60 }
 0x1d6   :  { %1668 = vmatpush.bf16.msrb.mxu3 %v2729_v14  ;;  %v2874_v14 = vld [vmem:[%s5497_s14 + $0x150] sm:$0xf0] }
 0x1d7   :  { %v2877_v17 = vor.u32 %v3596_v13, %v2874_v14  ;;  %v3072_v13 = vld [vmem:[%s5497_s14 + $0x2c8] sm:$0xf]  ;;  %v3647_v14 = vld [vmem:[%s5497_s14 + $0x2d4] sm:$0xf0] }
 0x1da   :  { %1669 = vmatpush.bf16.msrb.mxu3 %v2713_v35  ;;  %v3130_v35 = vld [vmem:[%s5497_s14 + $0x350] sm:$0xf0] }
 0x22e   :  { %v756_v37 = vpop.permute.xlu0 %755 }
 0x22f   :  { %v758_v55 = vmul.f32 %v756_v37, %v750_v44  ;;  %v2829_v37 = vor.u32 %v3584_v22, %v2826_v26  ;;  %v3069_v44 = vor.u32 %v3644_v33, %v3066_v34  ;;  %v2765_v22 = vor.u32 %v3568_v19, %v2762_v20  ;;  %v2858_v26 = vld [vmem:[%s5497_s14 + $0x130] sm:$0xf0]  ;;  %v3660_v33 = vld [vmem:[%s5497_s14 + $0x344] sm:$0xf] }
 0x230   :  { %v2861_v27 = vor.u32 %v3592_v25, %v2858_v26  ;;  %v2749_v34 = vor.u32 %v3564_v31, %v2746_v32  ;;  %v3133_v36 = vor.u32 %v3660_v33, %v3130_v35  ;;  %v3073_v26 = vor.u32 %v3647_v14, %v3072_v13  ;;  %v3056_v31 = vld [vmem:[%s5497_s14 + $0x2a8] sm:$0xf]  ;;  %v3643_v32 = vld [vmem:[%s5497_s14 + $0x2b4] sm:$0xf0] }
 0x231   :  { %v759_v6 = vadd.f32 %v758_v55, %v4227_v12  ;;  %v2954_v12 = vld [vmem:[%s5497_s14 + $0x1f0] sm:$0xf0]  ;;  %v2925_v55 = vor.u32 %v3608_v45, %v2922_v46  ;;  %v3656_v45 = vld [vmem:[%s5497_s14 + $0x324] sm:$0xf]  ;;  %v2816_v35 = vld [vmem:[%s5497_s14 + $0xc8] sm:$0xf]  ;;  %v3057_v41 = vor.u32 %v3643_v32, %v3056_v31 }
 0x232   :  { %v2957_v29 = vor.u32 %v3616_v9, %v2954_v12  ;;  %v2781_v9 = vor.u32 %v3572_v63, %v2778_v0  ;;  %v3021_v12 = vor.u32 %v3632_v7, %v3018_v8  ;;  %v3088_v0 = vld [vmem:[%s5497_s14 + $0x2e8] sm:$0xf]  ;;  %v3571_v13 = vld [vmem:[%s5497_s14 + $0x74] sm:$0xf0] }
 0x233   :  { %v3591_v31 = vld [vmem:[%s5497_s14 + $0x114] sm:$0xf0]  ;;  %v2976_v32 = vld [vmem:[%s5497_s14 + $0x208] sm:$0xf] }
 0x236   :  { %v746_v2 = vpop.permute.xlu0 %745 }
 0x237   :  { %vm747_vm2 = vcmp.eq.s32.totalorder %v746_v2, %v741_v56  ;;  %v3053_v56 = vor.u32 %v3640_v47, %v3050_v48  ;;  %v3162_v2 = vld [vmem:[%s5497_s14 + $0x390] sm:$0xf0] }
 0x238   :  { %v2673_v11 = vsel %vm747_vm2, 1.0, %v3785_v10  ;;  %v3165_v10 = vor.u32 %v3668_v1, %v3162_v2  ;;  %v3114_v47 = vld [vmem:[%s5497_s14 + $0x330] sm:$0xf0]  ;;  %v3651_v1 = vld [vmem:[%s5497_s14 + $0x2f4] sm:$0xf0] }
 0x239   :  { %v760_v16 = vadd.f32 %v2673_v11, %v759_v6  ;;  %v2890_v6 = vld [vmem:[%s5497_s14 + $0x170] sm:$0xf0]  ;;  %v3117_v48 = vor.u32 %v3656_v45, %v3114_v47  ;;  %v3089_v8 = vor.u32 %v3651_v1, %v3088_v0  ;;  %v3639_v47 = vld [vmem:[%s5497_s14 + $0x294] sm:$0xf0]  ;;  %v3168_v1 = vld [vmem:[%s5497_s14 + $0x388] sm:$0xf] }
 0x23a   :  { %v2893_v11 = vor.u32 %v3600_v5, %v2890_v6 }
 0x23b   :  { %v769_v23 = vpack.c.bf16 %v760_v16, %v760_v16  ;;  %v3002_v16 = vld [vmem:[%s5497_s14 + $0x250] sm:$0xf0] }
 0x23c   :  { %v3005_v18 = vor.u32 %v3628_v15, %v3002_v16 }
 0x23d   :  { %2706 = vmatmul.msk.bf16.vlgmr.msra.gmra.mxu3 %vm820_vm3, %v769_v23  ;;  %2707 = vmatmul.msk.bf16.vlgmr.msrb.gmra.mxu0 %vm820_vm3, %v769_v23 }
 0x23e   :  { %2708 = vmatmul.msk.bf16.vlgmr.msrb.gmra.mxu1 %vm820_vm3, %v769_v23  ;;  %2709 = vmatmul.msk.bf16.vlgmr.msrb.gmra.mxu2 %vm820_vm3, %v769_v23  ;;  %v3146_v23 = vld [vmem:[%s5497_s14 + $0x370] sm:$0xf0] }
 0x23f   :  { %1727 = vmatpush.bf16.msrb.mxu0 %v2957_v29  ;;  %1740 = vmatpush.bf16.msrb.mxu1 %v3085_v30  ;;  %v3149_v24 = vor.u32 %v3664_v21, %v3146_v23  ;;  %v2986_v29 = vld [vmem:[%s5497_s14 + $0x230] sm:$0xf0]  ;;  %v3683_v23 = vld [vmem:[%s5497_s14 + $0x3f4] sm:$0xf0] }
 0x240   :  { %1714 = vmatpush.bf16.msra.mxu3 %v2829_v37  ;;  %1753 = vmatpush.bf16.msrb.mxu2 %v3213_v38  ;;  %v2989_v30 = vor.u32 %v3624_v28, %v2986_v29  ;;  %v3588_v37 = vld [vmem:[%s5497_s14 + $0x104] sm:$0xf]  ;;  %v2842_v38 = vld [vmem:[%s5497_s14 + $0x110] sm:$0xf0]  ;;  %v3611_v28 = vld [vmem:[%s5497_s14 + $0x1b4] sm:$0xf0] }
 0x241   :  { %v2845_v40 = vor.u32 %v3588_v37, %v2842_v38 }
 0x243   :  { %1728 = vmatpush.bf16.msrb.mxu0 %v2941_v43  ;;  %1741 = vmatpush.bf16.msrb.mxu1 %v3069_v44  ;;  %v3560_v43 = vld [vmem:[%s5497_s14 + $0x24] sm:$0xf]  ;;  %v2730_v44 = vld [vmem:[%s5497_s14 + $0x30] sm:$0xf0] }
 0x244   :  { %1715 = vmatpush.bf16.msra.mxu3 %v2813_v49  ;;  %1754 = vmatpush.bf16.msrb.mxu2 %v3197_v50  ;;  %v2733_v46 = vor.u32 %v3560_v43, %v2730_v44  ;;  %v3556_v49 = vld [vmem:[%s5497_s14 + $0x4] sm:$0xf]  ;;  %v2714_v50 = vld [vmem:[%s5497_s14 + $0x10] sm:$0xf0]  ;;  %v3607_v43 = vld [vmem:[%s5497_s14 + $0x194] sm:$0xf0] }
 0x245   :  { %v2717_v51 = vor.u32 %v3556_v49, %v2714_v50  ;;  %v2800_v50 = vld [vmem:[%s5497_s14 + $0xa8] sm:$0xf] }
 0x247   :  { %1729 = vmatpush.bf16.msrb.mxu0 %v2925_v55  ;;  %1742 = vmatpush.bf16.msrb.mxu1 %v3053_v56  ;;  %v770_v55 = vld [vmem:[%s5496_s13] sm:$0xf]  ;;  %s2379_s13 = sshll.u32 %s3786_s4, 4  ;;  %s2380_s13 = int_to_ptr.vmem [resolvable:$true] %s2379_s13 }
 0x248   :  { %1716 = vmatpush.bf16.msra.mxu3 %v2797_v61  ;;  %1755 = vmatpush.bf16.msrb.mxu2 %v3181_v62  ;;  %v773_v56 = vperm.slane %v770_v55, 1  ;;  %v774_v57 = vperm.slane %v770_v55, 2  ;;  %v2960_v61 = vld [vmem:[%s5497_s14 + $0x1e8] sm:$0xf]  ;;  %v3619_v62 = vld [vmem:[%s5497_s14 + $0x1f4] sm:$0xf0] }
 0x249   :  { %v775_v5 = vperm.slane %v770_v55, 3  ;;  %v2961_v6 = vor.u32 %v3619_v62, %v2960_v61  ;;  %v2784_v62 = vld [vmem:[%s5497_s14 + $0x88] sm:$0xf] }
 0x24b   :  { %1730 = vmatpush.bf16.msrb.mxu0 %v2909_v3  ;;  %1743 = vmatpush.bf16.msrb.mxu1 %v3037_v4  ;;  %v772_v3 = vperm.slane %v770_v55, 0 }
 0x24c   :  { %1717 = vmatpush.bf16.msra.mxu3 %v2781_v9  ;;  %1756 = vmatpush.bf16.msrb.mxu2 %v3165_v10  ;;  %v2944_v9 = vld [vmem:[%s5497_s14 + $0x1c8] sm:$0xf]  ;;  %v3615_v10 = vld [vmem:[%s5497_s14 + $0x1d4] sm:$0xf0] }
 0x24d   :  { %v2945_v21 = vor.u32 %v3615_v10, %v2944_v9  ;;  %v3631_v9 = vld [vmem:[%s5497_s14 + $0x254] sm:$0xf0] }
 0x24f   :  { %1731 = vmatpush.bf16.msrb.mxu0 %v2893_v11  ;;  %1744 = vmatpush.bf16.msrb.mxu1 %v3021_v12 }
 0x250   :  { %1718 = vmatpush.bf16.msra.mxu3 %v2765_v22  ;;  %1757 = vmatpush.bf16.msrb.mxu2 %v3149_v24  ;;  %v3216_v22 = vld [vmem:[%s5497_s14 + $0x3e8] sm:$0xf] }
 0x253   :  { %1732 = vmatpush.bf16.msrb.mxu0 %v2877_v17  ;;  %1745 = vmatpush.bf16.msrb.mxu1 %v3005_v18  ;;  %v2832_v17 = vld [vmem:[%s5497_s14 + $0xe8] sm:$0xf]  ;;  %v3587_v18 = vld [vmem:[%s5497_s14 + $0xf4] sm:$0xf0] }
 0x254   :  { %1719 = vmatpush.bf16.msra.mxu3 %v2749_v34  ;;  %1758 = vmatpush.bf16.msrb.mxu2 %v3133_v36  ;;  %v3217_v34 = vor.u32 %v3683_v23, %v3216_v22  ;;  %v3583_v36 = vld [vmem:[%s5497_s14 + $0xd4] sm:$0xf0] }
 0x255   :  { %v2817_v45 = vor.u32 %v3583_v36, %v2816_v35  ;;  %v3627_v22 = vld [vmem:[%s5497_s14 + $0x234] sm:$0xf0]  ;;  %v3617_v36 = vld [vmem:[%s5497_s14 + $0x1ec] sm:$0xf] }
 0x257   :  { %1733 = vmatpush.bf16.msrb.mxu0 %v2861_v27  ;;  %1746 = vmatpush.bf16.msrb.mxu1 %v2989_v30  ;;  %v2928_v27 = vld [vmem:[%s5497_s14 + $0x1a8] sm:$0xf]  ;;  %v2833_v30 = vor.u32 %v3587_v18, %v2832_v17 }
 0x258   :  { %1720 = vmatpush.bf16.msra.mxu3 %v2733_v46  ;;  %1759 = vmatpush.bf16.msrb.mxu2 %v3117_v48  ;;  %v2929_v38 = vor.u32 %v3611_v28, %v2928_v27  ;;  %v3040_v46 = vld [vmem:[%s5497_s14 + $0x288] sm:$0xf]  ;;  %v3663_v28 = vld [vmem:[%s5497_s14 + $0x354] sm:$0xf0] }
 0x259   :  { %v3041_v55 = vor.u32 %v3639_v47, %v3040_v46  ;;  %v2864_v18 = vld [vmem:[%s5497_s14 + $0x128] sm:$0xf]  ;;  %v3659_v46 = vld [vmem:[%s5497_s14 + $0x334] sm:$0xf0] }
 0x25a   :  { %v3136_v27 = vld [vmem:[%s5497_s14 + $0x348] sm:$0xf] }
 0x25b   :  { %1734 = vmatpush.bf16.msrb.mxu0 %v2845_v40  ;;  %1747 = vmatpush.bf16.msrb.mxu1 %v2973_v42  ;;  %v3679_v40 = vld [vmem:[%s5497_s14 + $0x3d4] sm:$0xf0]  ;;  %v2912_v42 = vld [vmem:[%s5497_s14 + $0x188] sm:$0xf] }
 0x25c   :  { %1721 = vmatpush.bf16.msra.mxu3 %v2717_v51  ;;  %1760 = vmatpush.bf16.msrb.mxu2 %v3101_v54  ;;  %v3201_v49 = vor.u32 %v3679_v40, %v3200_v39  ;;  %v3579_v51 = vld [vmem:[%s5497_s14 + $0xb4] sm:$0xf0]  ;;  %v2913_v52 = vor.u32 %v3607_v43, %v2912_v42  ;;  %v3649_v39 = vld [vmem:[%s5497_s14 + $0x2ec] sm:$0xf]  ;;  %v3137_v40 = vor.u32 %v3663_v28, %v3136_v27  ;;  %v2736_v42 = vld [vmem:[%s5497_s14 + $0x28] sm:$0xf] }
 0x25d   :  { %v3675_v54 = vld [vmem:[%s5497_s14 + $0x3b4] sm:$0xf0]  ;;  %v3673_v27 = vld [vmem:[%s5497_s14 + $0x3ac] sm:$0xf]  ;;  %v3186_v28 = vld [vmem:[%s5497_s14 + $0x3b8] sm:$0xf0] }
 0x25e   :  { %v3185_v61 = vor.u32 %v3675_v54, %v3184_v53  ;;  %v3563_v43 = vld [vmem:[%s5497_s14 + $0x34] sm:$0xf0]  ;;  %v3645_v53 = vld [vmem:[%s5497_s14 + $0x2cc] sm:$0xf]  ;;  %v3074_v54 = vld [vmem:[%s5497_s14 + $0x2d8] sm:$0xf0] }
 0x2ba   :  { %v846_v58 = vpop.f32.mrf.mxu0 }
 0x2bb   :  { %v847_v59 = vadd.f32 %v846_v58, %v773_v56  ;;  %v859_v60 = vpop.f32.mrf.mxu1  ;;  %v2896_v56 = vld [vmem:[%s5497_s14 + $0x168] sm:$0xf]  ;;  %v2801_v58 = vor.u32 %v3579_v51, %v2800_v50  ;;  %v2737_v51 = vor.u32 %v3563_v43, %v2736_v42  ;;  %v3170_v42 = vld [vmem:[%s5497_s14 + $0x398] sm:$0xf0] }
 0x2bc   :  { %v860_v63 = vadd.f32 %v859_v60, %v774_v57  ;;  %v3603_v57 = vld [vmem:[%s5497_s14 + $0x174] sm:$0xf0] }
 0x2bd   :  { %v877_v2 = vmax.f32 %v847_v59, 0.0  ;;  %v3024_v59 = vld [vmem:[%s5497_s14 + $0x268] sm:$0xf]  ;;  %v3635_v60 = vld [vmem:[%s5497_s14 + $0x274] sm:$0xf0]  ;;  %v2897_v0 = vor.u32 %v3603_v57, %v2896_v56 }
 0x2be   :  { %v878_v4 = vmax.f32 %v860_v63, 0.0  ;;  %v3575_v63 = vld [vmem:[%s5497_s14 + $0x94] sm:$0xf0]  ;;  %v2720_v56 = vld [vmem:[%s5497_s14 + $0x8] sm:$0xf] }
 0x2bf   :  { %v4688_v7 = vpack.c.bf16 %v877_v2, %v877_v2  ;;  %v3671_v2 = vld [vmem:[%s5497_s14 + $0x394] sm:$0xf0] }
 0x2c0   :  { %v4696_v11 = vpack.c.bf16 %v878_v4, %v878_v4  ;;  %v833_v12 = vpop.f32.mrf.mxu3  ;;  %v2880_v4 = vld [vmem:[%s5497_s14 + $0x148] sm:$0xf]  ;;  %v3169_v10 = vor.u32 %v3671_v2, %v3168_v1  ;;  %v3559_v57 = vld [vmem:[%s5497_s14 + $0x14] sm:$0xf0]  ;;  %v3077_v1 = vor.u32 %v3645_v53, %v3074_v54  ;;  %v3665_v53 = vld [vmem:[%s5497_s14 + $0x36c] sm:$0xf] }
 0x2c1   :  { %v834_v15 = vadd.f32 %v833_v12, %v772_v3  ;;  %v872_v16 = vpop.f32.mrf.mxu2  ;;  %1683 = vmatmul.bf16.vlgmr.msra.gmra.mxu0 %v4688_v7  ;;  %v3025_v3 = vor.u32 %v3635_v60, %v3024_v59  ;;  %v2768_v12 = vld [vmem:[%s5497_s14 + $0x68] sm:$0xf]  ;;  %v3655_v59 = vld [vmem:[%s5497_s14 + $0x314] sm:$0xf0]  ;;  %v3585_v60 = vld [vmem:[%s5497_s14 + $0xec] sm:$0xf]  ;;  %v2721_v2 = vor.u32 %v3559_v57, %v2720_v56 }
 0x2c2   :  { %v873_v19 = vadd.f32 %v872_v16, %v775_v5  ;;  %1696 = vmatmul.bf16.vlgmr.msra.gmra.mxu1 %v4696_v11  ;;  %1779 = vmatpush.bf16.msra.mxu0 %v2961_v6  ;;  %v848_v20 = vpop.f32.mrf.mxu0  ;;  %v3599_v5 = vld [vmem:[%s5497_s14 + $0x154] sm:$0xf0]  ;;  %v2785_v6 = vor.u32 %v3575_v63, %v2784_v62  ;;  %v3681_v63 = vld [vmem:[%s5497_s14 + $0x3ec] sm:$0xf]  ;;  %v3154_v54 = vld [vmem:[%s5497_s14 + $0x378] sm:$0xf0] }
 0x2c3   :  { %v876_v24 = vmax.f32 %v834_v15, 0.0  ;;  %1792 = vmatpush.bf16.msra.mxu1 %v3089_v8  ;;  %v861_v25 = vpop.f32.mrf.mxu1  ;;  %v3008_v8 = vld [vmem:[%s5497_s14 + $0x248] sm:$0xf]  ;;  %v2881_v14 = vor.u32 %v3599_v5, %v2880_v4  ;;  %v3667_v16 = vld [vmem:[%s5497_s14 + $0x374] sm:$0xf0]  ;;  %v2769_v20 = vor.u32 %v3571_v13, %v2768_v12 }
 0x2c4   :  { %v879_v29 = vmax.f32 %v873_v19, 0.0  ;;  %v3152_v15 = vld [vmem:[%s5497_s14 + $0x368] sm:$0xf]  ;;  %v3009_v17 = vor.u32 %v3631_v9, %v3008_v8  ;;  %v3595_v19 = vld [vmem:[%s5497_s14 + $0x134] sm:$0xf0] }
 0x2c5   :  { %v4730_v33 = vpack.c.bf16 %v876_v24, %v876_v24  ;;  %v3153_v23 = vor.u32 %v3667_v16, %v3152_v15  ;;  %v2752_v24 = vld [vmem:[%s5497_s14 + $0x48] sm:$0xf]  ;;  %v3567_v25 = vld [vmem:[%s5497_s14 + $0x54] sm:$0xf0]  ;;  %v2930_v4 = vld [vmem:[%s5497_s14 + $0x1b8] sm:$0xf0] }
 0x2c6   :  { %v4738_v37 = vpack.c.bf16 %v879_v29, %v879_v29  ;;  %1780 = vmatpush.bf16.msra.mxu0 %v2945_v21  ;;  %v2992_v21 = vld [vmem:[%s5497_s14 + $0x228] sm:$0xf]  ;;  %v2753_v35 = vor.u32 %v3567_v25, %v2752_v24  ;;  %v3641_v8 = vld [vmem:[%s5497_s14 + $0x2ac] sm:$0xf]  ;;  %v3058_v9 = vld [vmem:[%s5497_s14 + $0x2b8] sm:$0xf0] }
 0x2c7   :  { %1793 = vmatpush.bf16.msra.mxu1 %v3073_v26  ;;  %1670 = vmatmul.bf16.vlgmr.msrb.gmra.mxu3 %v4730_v33  ;;  %v2865_v26 = vor.u32 %v3595_v19, %v2864_v18  ;;  %v2848_v29 = vld [vmem:[%s5497_s14 + $0x108] sm:$0xf]  ;;  %v3581_v12 = vld [vmem:[%s5497_s14 + $0xcc] sm:$0xf]  ;;  %v2818_v13 = vld [vmem:[%s5497_s14 + $0xd8] sm:$0xf0] }
 0x2c8   :  { %1709 = vmatmul.bf16.vlgmr.msra.gmra.mxu2 %v4738_v37  ;;  %1766 = vmatpush.bf16.msrb.mxu3 %v2833_v30  ;;  %v835_v44 = vpop.f32.mrf.mxu3  ;;  %v2993_v30 = vor.u32 %v3627_v22, %v2992_v21  ;;  %v3677_v15 = vld [vmem:[%s5497_s14 + $0x3cc] sm:$0xf]  ;;  %v3202_v16 = vld [vmem:[%s5497_s14 + $0x3d8] sm:$0xf0] }
 0x2c9   :  { %1805 = vmatpush.bf16.msra.mxu2 %v3217_v34  ;;  %v874_v48 = vpop.f32.mrf.mxu2  ;;  %v3623_v34 = vld [vmem:[%s5497_s14 + $0x214] sm:$0xf0]  ;;  %v2849_v44 = vor.u32 %v3591_v31, %v2848_v29  ;;  %v3605_v18 = vld [vmem:[%s5497_s14 + $0x18c] sm:$0xf]  ;;  %v2914_v19 = vld [vmem:[%s5497_s14 + $0x198] sm:$0xf0] }
 0x2ca   :  { %1781 = vmatpush.bf16.msra.mxu0 %v2929_v38  ;;  %v2962_v38 = vld [vmem:[%s5497_s14 + $0x1f8] sm:$0xf0]  ;;  %v2977_v47 = vor.u32 %v3623_v34, %v2976_v32  ;;  %v3637_v21 = vld [vmem:[%s5497_s14 + $0x28c] sm:$0xf] }
 0x2cb   :  { %1794 = vmatpush.bf16.msra.mxu1 %v3057_v41  ;;  %v3090_v41 = vld [vmem:[%s5497_s14 + $0x2f8] sm:$0xf0]  ;;  %v2965_v48 = vor.u32 %v3617_v36, %v2962_v38  ;;  %v3577_v24 = vld [vmem:[%s5497_s14 + $0xac] sm:$0xf]  ;;  %v3189_v36 = vor.u32 %v3673_v27, %v3186_v28  ;;  %v3280_v27 = vld [vmem:[%s5499_s16 + $0x70] sm:$0xf] }
 0x2cc   :  { %1767 = vmatpush.bf16.msrb.mxu3 %v2817_v45  ;;  %v3120_v45 = vld [vmem:[%s5497_s14 + $0x328] sm:$0xf]  ;;  %v3093_v50 = vor.u32 %v3649_v39, %v3090_v41  ;;  %v3042_v22 = vld [vmem:[%s5497_s14 + $0x298] sm:$0xf0]  ;;  %v3633_v34 = vld [vmem:[%s5497_s14 + $0x26c] sm:$0xf] }
 0x2cd   :  { %1806 = vmatpush.bf16.msra.mxu2 %v3201_v49  ;;  %v3613_v49 = vld [vmem:[%s5497_s14 + $0x1cc] sm:$0xf]  ;;  %v2802_v25 = vld [vmem:[%s5497_s14 + $0xb8] sm:$0xf0]  ;;  %v3045_v29 = vor.u32 %v3637_v21, %v3042_v22  ;;  %v3699_v28 = vld [vmem:[%s5499_s16 + $0x74] sm:$0xf0] }
 0x2ce   :  { %1782 = vmatpush.bf16.msra.mxu0 %v2913_v52  ;;  %v2946_v52 = vld [vmem:[%s5497_s14 + $0x1d8] sm:$0xf0]  ;;  %v2805_v32 = vor.u32 %v3577_v24, %v2802_v25  ;;  %v3573_v38 = vld [vmem:[%s5497_s14 + $0x8c] sm:$0xf] }
 0x2cf   :  { %1795 = vmatpush.bf16.msra.mxu1 %v3041_v55  ;;  %v3121_v55 = vor.u32 %v3659_v46, %v3120_v45  ;;  %v2949_v62 = vor.u32 %v3613_v49, %v2946_v52  ;;  %v2898_v31 = vld [vmem:[%s5497_s14 + $0x178] sm:$0xf0]  ;;  %v3669_v41 = vld [vmem:[%s5497_s14 + $0x38c] sm:$0xf] }
 0x2d0   :  { %1768 = vmatpush.bf16.msrb.mxu3 %v2801_v58  ;;  %v3104_v58 = vld [vmem:[%s5497_s14 + $0x308] sm:$0xf]  ;;  %v2786_v39 = vld [vmem:[%s5497_s14 + $0x98] sm:$0xf0]  ;;  %v3173_v49 = vor.u32 %v3669_v41, %v3170_v42  ;;  %v3593_v56 = vld [vmem:[%s5497_s14 + $0x12c] sm:$0xf] }
 0x2d1   :  { %1807 = vmatpush.bf16.msra.mxu2 %v3185_v61  ;;  %1735 = vmatmul.bf16.vlgmr.msrb.gmra.mxu0 %v4688_v7  ;;  %v2834_v61 = vld [vmem:[%s5497_s14 + $0xf8] sm:$0xf0]  ;;  %v3105_v5 = vor.u32 %v3655_v59, %v3104_v58  ;;  %v2789_v46 = vor.u32 %v3573_v38, %v2786_v39  ;;  %v3625_v59 = vld [vmem:[%s5497_s14 + $0x22c] sm:$0xf]  ;;  %v3256_v38 = vld [vmem:[%s5499_s16 + $0x40] sm:$0xf] }
 0x2d2   :  { %1748 = vmatmul.bf16.vlgmr.msrb.gmra.mxu1 %v4696_v11  ;;  %1783 = vmatpush.bf16.msra.mxu0 %v2897_v0  ;;  %v3218_v0 = vld [vmem:[%s5497_s14 + $0x3f8] sm:$0xf0]  ;;  %v3653_v25 = vld [vmem:[%s5497_s14 + $0x30c] sm:$0xf]  ;;  %v3693_v39 = vld [vmem:[%s5499_s16 + $0x44] sm:$0xf0] }
 0x2d3   :  { %1796 = vmatpush.bf16.msra.mxu1 %v3025_v3  ;;  %v3609_v3 = vld [vmem:[%s5497_s14 + $0x1ac] sm:$0xf]  ;;  %v2882_v45 = vld [vmem:[%s5497_s14 + $0x158] sm:$0xf0]  ;;  %v3248_v41 = vld [vmem:[%s5499_s16 + $0x30] sm:$0xf] }
 0x2d4   :  { %1769 = vmatpush.bf16.msrb.mxu3 %v2785_v6  ;;  %v2837_v6 = vor.u32 %v3585_v60, %v2834_v61  ;;  %v2866_v57 = vld [vmem:[%s5497_s14 + $0x138] sm:$0xf0]  ;;  %v3157_v61 = vor.u32 %v3665_v53, %v3154_v54  ;;  %v3240_v42 = vld [vmem:[%s5499_s16 + $0x20] sm:$0xf] }
 0x2d5   :  { %1808 = vmatpush.bf16.msra.mxu2 %v3169_v10  ;;  %v3221_v10 = vor.u32 %v3681_v63, %v3218_v0  ;;  %v2994_v60 = vld [vmem:[%s5497_s14 + $0x238] sm:$0xf0]  ;;  %v2869_v0 = vor.u32 %v3593_v56, %v2866_v57  ;;  %v3224_v54 = vld [vmem:[%s5499_s16] sm:$0xf] }
 0x2d6   :  { %1784 = vmatpush.bf16.msra.mxu0 %v2881_v14  ;;  %v2933_v14 = vor.u32 %v3609_v3, %v2930_v4  ;;  %v2754_v63 = vld [vmem:[%s5497_s14 + $0x58] sm:$0xf0]  ;;  %v2997_v3 = vor.u32 %v3625_v59, %v2994_v60  ;;  %v3589_v4 = vld [vmem:[%s5497_s14 + $0x10c] sm:$0xf]  ;;  %v3320_v56 = vld [vmem:[%s5499_s16 + $0xc0] sm:$0xf] }
 0x2d7   :  { %1797 = vmatpush.bf16.msra.mxu1 %v3009_v17  ;;  %1722 = vmatmul.bf16.vlgmr.msra.gmra.mxu3 %v4730_v33  ;;  %v3061_v17 = vor.u32 %v3641_v8, %v3058_v9  ;;  %v2978_v9 = vld [vmem:[%s5497_s14 + $0x218] sm:$0xf0]  ;;  %v3698_v59 = vld [vmem:[%s5499_s16 + $0x74] sm:$0xf] }
 0x2d8   :  { %1761 = vmatmul.bf16.vlgmr.msrb.gmra.mxu2 %v4738_v37  ;;  %1770 = vmatpush.bf16.msrb.mxu3 %v2769_v20  ;;  %v2821_v20 = vor.u32 %v3581_v12, %v2818_v13  ;;  %v3715_v12 = vld [vmem:[%s5499_s16 + $0xf4] sm:$0xf0]  ;;  %v2722_v24 = vld [vmem:[%s5497_s14 + $0x18] sm:$0xf0] }
 0x2d9   :  { %1809 = vmatpush.bf16.msra.mxu2 %v3153_v23  ;;  %v3205_v23 = vor.u32 %v3677_v15, %v3202_v16  ;;  %v2738_v15 = vld [vmem:[%s5497_s14 + $0x38] sm:$0xf0] }
 0x2da   :  { %1785 = vmatpush.bf16.msra.mxu0 %v2865_v26  ;;  %v2917_v26 = vor.u32 %v3605_v18, %v2914_v19  ;;  %v3122_v18 = vld [vmem:[%s5497_s14 + $0x338] sm:$0xf0] }
 0x2db   :  { %1798 = vmatpush.bf16.msra.mxu1 %v2993_v30  ;;  %v3601_v30 = vld [vmem:[%s5497_s14 + $0x16c] sm:$0xf]  ;;  %v3282_v60 = vld [vmem:[%s5499_s16 + $0x78] sm:$0xf0] }
 0x2dc   :  { %1771 = vmatpush.bf16.msrb.mxu3 %v2753_v35  ;;  %v3026_v35 = vld [vmem:[%s5497_s14 + $0x278] sm:$0xf0] }
 0x2dd   :  { %1810 = vmatpush.bf16.msra.mxu2 %v3137_v40  ;;  %v2901_v40 = vor.u32 %v3601_v30, %v2898_v31  ;;  %v3029_v43 = vor.u32 %v3633_v34, %v3026_v35  ;;  %v3281_v31 = vor.u32 %v3699_v28, %v3280_v27  ;;  %v3697_v34 = vld [vmem:[%s5499_s16 + $0x64] sm:$0xf0]  ;;  %v3288_v28 = vld [vmem:[%s5499_s16 + $0x80] sm:$0xf] }
 0x2de   :  { %1786 = vmatpush.bf16.msra.mxu0 %v2849_v44  ;;  %v3597_v44 = vld [vmem:[%s5497_s14 + $0x14c] sm:$0xf] }
 0x2df   :  { %1799 = vmatpush.bf16.msra.mxu1 %v2977_v47  ;;  %v3629_v47 = vld [vmem:[%s5497_s14 + $0x24c] sm:$0xf]  ;;  %v2885_v52 = vor.u32 %v3597_v44, %v2882_v45  ;;  %v3336_v44 = vld [vmem:[%s5499_s16 + $0xe0] sm:$0xf] }
 0x2e0   :  { %1772 = vmatpush.bf16.msrb.mxu3 %v2737_v51  ;;  %v2770_v51 = vld [vmem:[%s5497_s14 + $0x78] sm:$0xf0] }
 0x2e1   :  { %1811 = vmatpush.bf16.msra.mxu2 %v3121_v55  ;;  %1787 = vmatmul.bf16.vlgmr.msra.gmra.mxu0 %v4688_v7 }
 0x2e2   :  { %1831 = vmatpush.bf16.msrb.mxu0 %v2965_v48  ;;  %1800 = vmatmul.bf16.vlgmr.msra.gmra.mxu1 %v4696_v11  ;;  %v3010_v48 = vld [vmem:[%s5497_s14 + $0x258] sm:$0xf0] }
 0x2e3   :  { %1844 = vmatpush.bf16.msrb.mxu1 %v3093_v50  ;;  %v3569_v50 = vld [vmem:[%s5497_s14 + $0x6c] sm:$0xf]  ;;  %v3013_v55 = vor.u32 %v3629_v47, %v3010_v48  ;;  %v3232_v47 = vld [vmem:[%s5499_s16 + $0x10] sm:$0xf]  ;;  %v3687_v48 = vld [vmem:[%s5499_s16 + $0x14] sm:$0xf0] }
 0x2e4   :  { %1773 = vmatpush.bf16.msrb.mxu3 %v2721_v2  ;;  %v2773_v58 = vor.u32 %v3569_v50, %v2770_v51  ;;  %v3138_v2 = vld [vmem:[%s5497_s14 + $0x358] sm:$0xf0]  ;;  %v3328_v50 = vld [vmem:[%s5499_s16 + $0xd0] sm:$0xf]  ;;  %v3711_v51 = vld [vmem:[%s5499_s16 + $0xd4] sm:$0xf0] }
 0x2e5   :  { %1812 = vmatpush.bf16.msra.mxu2 %v3105_v5  ;;  %v2850_v5 = vld [vmem:[%s5497_s14 + $0x118] sm:$0xf0]  ;;  %v3329_v53 = vor.u32 %v3711_v51, %v3328_v50 }
 0x2e6   :  { %1832 = vmatpush.bf16.msrb.mxu0 %v2949_v62  ;;  %v3565_v62 = vld [vmem:[%s5497_s14 + $0x4c] sm:$0xf]  ;;  %v2853_v16 = vor.u32 %v3589_v4, %v2850_v5  ;;  %v3696_v4 = vld [vmem:[%s5499_s16 + $0x64] sm:$0xf] }
 0x2e7   :  { %1845 = vmatpush.bf16.msrb.mxu1 %v3077_v1  ;;  %1774 = vmatmul.bf16.vlgmr.msrb.gmra.mxu3 %v4730_v33  ;;  %v3661_v1 = vld [vmem:[%s5497_s14 + $0x34c] sm:$0xf]  ;;  %v2757_v8 = vor.u32 %v3565_v62, %v2754_v63  ;;  %v3285_v62 = vor.u32 %v3698_v59, %v3282_v60  ;;  %v3312_v63 = vld [vmem:[%s5499_s16 + $0xb0] sm:$0xf]  ;;  %v3719_v60 = vld [vmem:[%s5499_s16 + $0x114] sm:$0xf0] }
 0x2e8   :  { %1818 = vmatpush.bf16.msra.mxu3 %v2837_v6  ;;  %1813 = vmatmul.bf16.vlgmr.msra.gmra.mxu2 %v4738_v37  ;;  %v3621_v6 = vld [vmem:[%s5497_s14 + $0x20c] sm:$0xf]  ;;  %v3141_v13 = vor.u32 %v3661_v1, %v3138_v2  ;;  %v3408_v1 = vld [vmem:[%s5499_s16 + $0x170] sm:$0xf] }
 0x2e9   :  { %1857 = vmatpush.bf16.msrb.mxu2 %v3221_v10  ;;  %v3344_v10 = vld [vmem:[%s5499_s16 + $0xf0] sm:$0xf]  ;;  %v2981_v19 = vor.u32 %v3621_v6, %v2978_v9  ;;  %v3274_v5 = vld [vmem:[%s5499_s16 + $0x68] sm:$0xf0]  ;;  %v3304_v9 = vld [vmem:[%s5499_s16 + $0xa0] sm:$0xf] }
 0x2ea   :  { %1833 = vmatpush.bf16.msrb.mxu0 %v2933_v14  ;;  %v3561_v14 = vld [vmem:[%s5497_s14 + $0x2c] sm:$0xf]  ;;  %v3360_v59 = vld [vmem:[%s5499_s16 + $0x110] sm:$0xf] }
 0x2eb   :  { %1846 = vmatpush.bf16.msrb.mxu1 %v3061_v17  ;;  %v3657_v17 = vld [vmem:[%s5497_s14 + $0x32c] sm:$0xf]  ;;  %v2741_v21 = vor.u32 %v3561_v14, %v2738_v15  ;;  %v3729_v14 = vld [vmem:[%s5499_s16 + $0x164] sm:$0xf0]  ;;  %v3694_v15 = vld [vmem:[%s5499_s16 + $0x54] sm:$0xf] }
 0x2ec   :  { %1819 = vmatpush.bf16.msra.mxu3 %v2821_v20  ;;  %v3345_v20 = vor.u32 %v3715_v12, %v3344_v10  ;;  %v3125_v22 = vor.u32 %v3657_v17, %v3122_v18  ;;  %v3705_v10 = vld [vmem:[%s5499_s16 + $0xa4] sm:$0xf0]  ;;  %v3400_v12 = vld [vmem:[%s5499_s16 + $0x160] sm:$0xf] }
 0x2ed   :  { %1858 = vmatpush.bf16.msrb.mxu2 %v3205_v23  ;;  %v3557_v23 = vld [vmem:[%s5497_s14 + $0xc] sm:$0xf]  ;;  %v3401_v17 = vor.u32 %v3729_v14, %v3400_v12  ;;  %v3706_v14 = vld [vmem:[%s5499_s16 + $0xb4] sm:$0xf] }
 0x2ee   :  { %1834 = vmatpush.bf16.msrb.mxu0 %v2917_v26  ;;  %v3106_v26 = vld [vmem:[%s5497_s14 + $0x318] sm:$0xf0] }
 0x2ef   :  { %1847 = vmatpush.bf16.msrb.mxu1 %v3045_v29  ;;  %v2725_v29 = vor.u32 %v3557_v23, %v2722_v24  ;;  %v3109_v30 = vor.u32 %v3653_v25, %v3106_v26  ;;  %v3727_v23 = vld [vmem:[%s5499_s16 + $0x154] sm:$0xf0]  ;;  %v3692_v24 = vld [vmem:[%s5499_s16 + $0x44] sm:$0xf]  ;;  %v3258_v25 = vld [vmem:[%s5499_s16 + $0x48] sm:$0xf0] }
 0x2f0   :  { %1820 = vmatpush.bf16.msra.mxu3 %v2805_v32  ;;  %v3272_v32 = vld [vmem:[%s5499_s16 + $0x60] sm:$0xf]  ;;  %v3261_v27 = vor.u32 %v3692_v24, %v3258_v25 }
 0x2f1   :  { %1859 = vmatpush.bf16.msrb.mxu2 %v3189_v36  ;;  %v3273_v35 = vor.u32 %v3697_v34, %v3272_v32  ;;  %v3725_v32 = vld [vmem:[%s5499_s16 + $0x144] sm:$0xf0]  ;;  %v3690_v34 = vld [vmem:[%s5499_s16 + $0x34] sm:$0xf] }
 0x2f2   :  { %1835 = vmatpush.bf16.msrb.mxu0 %v2901_v40  ;;  %v3257_v40 = vor.u32 %v3693_v39, %v3256_v38  ;;  %v3346_v38 = vld [vmem:[%s5499_s16 + $0xf8] sm:$0xf0] }
 0x2f3   :  { %1848 = vmatpush.bf16.msrb.mxu1 %v3029_v43  ;;  %v3689_v43 = vld [vmem:[%s5499_s16 + $0x24] sm:$0xf0] }
 0x2f4   :  { %1821 = vmatpush.bf16.msra.mxu3 %v2789_v46  ;;  %v3241_v45 = vor.u32 %v3689_v43, %v3240_v42  ;;  %v3713_v46 = vld [vmem:[%s5499_s16 + $0xe4] sm:$0xf0]  ;;  %v3242_v42 = vld [vmem:[%s5499_s16 + $0x28] sm:$0xf0]  ;;  %v3712_v43 = vld [vmem:[%s5499_s16 + $0xe4] sm:$0xf] }
 0x2f5   :  { %1860 = vmatpush.bf16.msrb.mxu2 %v3173_v49  ;;  %v3337_v49 = vor.u32 %v3713_v46, %v3336_v44 }
 0x2f6   :  { %1836 = vmatpush.bf16.msrb.mxu0 %v2885_v52  ;;  %v3233_v52 = vor.u32 %v3687_v48, %v3232_v47  ;;  %v3368_v48 = vld [vmem:[%s5499_s16 + $0x120] sm:$0xf] }
 0x2f7   :  { %1849 = vmatpush.bf16.msrb.mxu1 %v3013_v55  ;;  %v3685_v55 = vld [vmem:[%s5499_s16 + $0x4] sm:$0xf0] }
 0x2f8   :  { %1822 = vmatpush.bf16.msra.mxu3 %v2773_v58  ;;  %v3225_v57 = vor.u32 %v3685_v55, %v3224_v54  ;;  %v3709_v58 = vld [vmem:[%s5499_s16 + $0xc4] sm:$0xf0]  ;;  %v3710_v54 = vld [vmem:[%s5499_s16 + $0xd4] sm:$0xf] }
 0x2f9   :  { %1861 = vmatpush.bf16.msrb.mxu2 %v3157_v61  ;;  %v3321_v61 = vor.u32 %v3709_v58, %v3320_v56  ;;  %v3330_v56 = vld [vmem:[%s5499_s16 + $0xd8] sm:$0xf0]  ;;  %v5279_v58 = vld [vmem:[%s5498_s15] sm:$0xf] }
 0x2fa   :  { %1837 = vmatpush.bf16.msrb.mxu0 %v2869_v0  ;;  %v3707_v0 = vld [vmem:[%s5499_s16 + $0xb4] sm:$0xf0] }
 0x2fb   :  { %1850 = vmatpush.bf16.msrb.mxu1 %v2997_v3  ;;  %v3313_v2 = vor.u32 %v3707_v0, %v3312_v63  ;;  %v3731_v3 = vld [vmem:[%s5499_s16 + $0x174] sm:$0xf0]  ;;  %v3226_v63 = vld [vmem:[%s5499_s16 + $0x8] sm:$0xf0]  ;;  %v3708_v0 = vld [vmem:[%s5499_s16 + $0xc4] sm:$0xf] }
 0x2fc   :  { %1823 = vmatpush.bf16.msra.mxu3 %v2757_v8  ;;  %v3409_v6 = vor.u32 %v3731_v3, %v3408_v1  ;;  %v3277_v8 = vor.u32 %v3696_v4, %v3274_v5  ;;  %v1014_v3 = vperm.slane %v5279_v58, 0 }
 0x2fd   :  { %1862 = vmatpush.bf16.msrb.mxu2 %v3141_v13  ;;  %v3305_v13 = vor.u32 %v3705_v10, %v3304_v9  ;;  %v3472_v9 = vld [vmem:[%s5499_s16 + $0x1f0] sm:$0xf] }
 0x2fe   :  { %1838 = vmatpush.bf16.msrb.mxu0 %v2853_v16  ;;  %v3266_v16 = vld [vmem:[%s5499_s16 + $0x58] sm:$0xf0] }
 0x2ff   :  { %1851 = vmatpush.bf16.msrb.mxu1 %v2981_v19  ;;  %v3269_v18 = vor.u32 %v3694_v15, %v3266_v16  ;;  %v3296_v19 = vld [vmem:[%s5499_s16 + $0x90] sm:$0xf]  ;;  %v3314_v15 = vld [vmem:[%s5499_s16 + $0xb8] sm:$0xf0] }
 0x300   :  { %1824 = vmatpush.bf16.msra.mxu3 %v2741_v21  ;;  %v3392_v21 = vld [vmem:[%s5499_s16 + $0x150] sm:$0xf] }
 0x301   :  { %1863 = vmatpush.bf16.msrb.mxu2 %v3125_v22  ;;  %1839 = vmatmul.bf16.vlgmr.msrb.gmra.mxu0 %v4688_v7  ;;  %v3264_v7 = vld [vmem:[%s5499_s16 + $0x50] sm:$0xf]  ;;  %v3393_v26 = vor.u32 %v3727_v23, %v3392_v21  ;;  %v3745_v23 = vld [vmem:[%s5499_s16 + $0x1e4] sm:$0xf0] }
 0x302   :  { %2281 = vmatpush.bf16.msra.mxu0 %v3345_v20  ;;  %1852 = vmatmul.bf16.vlgmr.msrb.gmra.mxu1 %v4696_v11  ;;  %v3695_v11 = vld [vmem:[%s5499_s16 + $0x54] sm:$0xf0] }
 0x303   :  { %v3265_v36 = vor.u32 %v3695_v11, %v3264_v7  ;;  %2294 = vmatpush.bf16.msra.mxu1 %v3409_v6  ;;  %v3703_v20 = vld [vmem:[%s5499_s16 + $0x94] sm:$0xf0]  ;;  %v3352_v6 = vld [vmem:[%s5499_s16 + $0x100] sm:$0xf] }
 0x304   :  { %1825 = vmatpush.bf16.msra.mxu3 %v2725_v29  ;;  %v3297_v22 = vor.u32 %v3703_v20, %v3296_v19  ;;  %v3701_v29 = vld [vmem:[%s5499_s16 + $0x84] sm:$0xf0]  ;;  %v3410_v19 = vld [vmem:[%s5499_s16 + $0x178] sm:$0xf0] }
 0x305   :  { %1864 = vmatpush.bf16.msrb.mxu2 %v3109_v30  ;;  %v3384_v30 = vld [vmem:[%s5499_s16 + $0x140] sm:$0xf] }
 0x306   :  { %2282 = vmatpush.bf16.msra.mxu0 %v3337_v49  ;;  %v3385_v7 = vor.u32 %v3725_v32, %v3384_v30  ;;  %v3721_v49 = vld [vmem:[%s5499_s16 + $0x124] sm:$0xf0] }
 0x307   :  { %1826 = vmatmul.bf16.vlgmr.msra.gmra.mxu3 %v4730_v33  ;;  %v3691_v33 = vld [vmem:[%s5499_s16 + $0x34] sm:$0xf0]  ;;  %2295 = vmatpush.bf16.msra.mxu1 %v3401_v17  ;;  %v3369_v51 = vor.u32 %v3721_v49, %v3368_v48  ;;  %v3317_v17 = vor.u32 %v3706_v14, %v3314_v15  ;;  %v3424_v15 = vld [vmem:[%s5499_s16 + $0x190] sm:$0xf] }
 0x308   :  { %2268 = vmatpush.bf16.msrb.mxu3 %v3281_v31  ;;  %1865 = vmatmul.bf16.vlgmr.msrb.gmra.mxu2 %v4738_v37  ;;  %v3249_v37 = vor.u32 %v3691_v33, %v3248_v41  ;;  %v3289_v31 = vor.u32 %v3701_v29, %v3288_v28  ;;  %v3723_v41 = vld [vmem:[%s5499_s16 + $0x134] sm:$0xf0]  ;;  %v3306_v28 = vld [vmem:[%s5499_s16 + $0xa8] sm:$0xf0]  ;;  %v3728_v29 = vld [vmem:[%s5499_s16 + $0x164] sm:$0xf] }
 0x30a   :  { %2283 = vmatpush.bf16.msra.mxu0 %v3329_v53  ;;  %v3234_v53 = vld [vmem:[%s5499_s16 + $0x18] sm:$0xf0] }
 0x30b   :  { %2296 = vmatpush.bf16.msra.mxu1 %v3393_v26 }
 0x30c   :  { %2269 = vmatpush.bf16.msrb.mxu3 %v3273_v35  ;;  %v3250_v35 = vld [vmem:[%s5499_s16 + $0x38] sm:$0xf0] }
 0x30d   :  { %v3253_v11 = vor.u32 %v3690_v34, %v3250_v35 }
 0x30e   :  { %2284 = vmatpush.bf16.msra.mxu0 %v3321_v61  ;;  %v3361_v61 = vor.u32 %v3719_v60, %v3360_v59  ;;  %v3440_v60 = vld [vmem:[%s5499_s16 + $0x1b0] sm:$0xf] }
 0x30f   :  { %2297 = vmatpush.bf16.msra.mxu1 %v3385_v7  ;;  %v3456_v7 = vld [vmem:[%s5499_s16 + $0x1d0] sm:$0xf] }
 0x310   :  { %2270 = vmatpush.bf16.msrb.mxu3 %v3265_v36  ;;  %v3714_v36 = vld [vmem:[%s5499_s16 + $0xf4] sm:$0xf] }
 0x311   :  { %v3349_v39 = vor.u32 %v3714_v36, %v3346_v38 }
 0x312   :  { %2285 = vmatpush.bf16.msra.mxu0 %v3313_v2  ;;  %v3322_v2 = vld [vmem:[%s5499_s16 + $0xc8] sm:$0xf0] }
 0x313   :  { %v3325_v4 = vor.u32 %v3708_v0, %v3322_v2  ;;  %v3378_v2 = vld [vmem:[%s5499_s16 + $0x138] sm:$0xf0] }
 0x314   :  { %2271 = vmatpush.bf16.msrb.mxu3 %v3257_v40  ;;  %v3376_v40 = vld [vmem:[%s5499_s16 + $0x130] sm:$0xf] }
 0x315   :  { %v3377_v33 = vor.u32 %v3723_v41, %v3376_v40  ;;  %v3702_v40 = vld [vmem:[%s5499_s16 + $0x94] sm:$0xf]  ;;  %v3298_v41 = vld [vmem:[%s5499_s16 + $0x98] sm:$0xf0] }
 0x316   :  { %2286 = vmatpush.bf16.msra.mxu0 %v3305_v13  ;;  %v3747_v13 = vld [vmem:[%s5499_s16 + $0x1f4] sm:$0xf0] }
 0x317   :  { %2298 = vmatpush.bf16.msra.mxu1 %v3377_v33  ;;  %v3473_v16 = vor.u32 %v3747_v13, %v3472_v9  ;;  %v3726_v33 = vld [vmem:[%s5499_s16 + $0x154] sm:$0xf]  ;;  %v3370_v13 = vld [vmem:[%s5499_s16 + $0x128] sm:$0xf0] }
 0x318   :  { %2272 = vmatpush.bf16.msrb.mxu3 %v3249_v37  ;;  %v3688_v37 = vld [vmem:[%s5499_s16 + $0x24] sm:$0xf] }
 0x319   :  { %v3245_v44 = vor.u32 %v3688_v37, %v3242_v42  ;;  %2307 = vmatpush.bf16.msra.mxu2 %v3473_v16  ;;  %v3301_v37 = vor.u32 %v3702_v40, %v3298_v41  ;;  %v3394_v42 = vld [vmem:[%s5499_s16 + $0x158] sm:$0xf0]  ;;  %v3735_v16 = vld [vmem:[%s5499_s16 + $0x194] sm:$0xf0]  ;;  %v1016_v41 = vperm.slane %v5279_v58, 2 }
 0x31a   :  { %2287 = vmatpush.bf16.msra.mxu0 %v3297_v22  ;;  %v3464_v22 = vld [vmem:[%s5499_s16 + $0x1e0] sm:$0xf] }
 0x31b   :  { %2299 = vmatpush.bf16.msra.mxu1 %v3369_v51  ;;  %v3465_v26 = vor.u32 %v3745_v23, %v3464_v22  ;;  %v3700_v51 = vld [vmem:[%s5499_s16 + $0x84] sm:$0xf] }
 0x31c   :  { %2273 = vmatpush.bf16.msrb.mxu3 %v3241_v45  ;;  %v3338_v45 = vld [vmem:[%s5499_s16 + $0xe8] sm:$0xf0] }
 0x31d   :  { %v3341_v46 = vor.u32 %v3712_v43, %v3338_v45  ;;  %2308 = vmatpush.bf16.msra.mxu2 %v3465_v26 }
 0x31e   :  { %2288 = vmatpush.bf16.msra.mxu0 %v3289_v31  ;;  %v3402_v31 = vld [vmem:[%s5499_s16 + $0x168] sm:$0xf0] }
 0x31f   :  { %2300 = vmatpush.bf16.msra.mxu1 %v3361_v61  ;;  %v3405_v34 = vor.u32 %v3728_v29, %v3402_v31  ;;  %v3739_v61 = vld [vmem:[%s5499_s16 + $0x1b4] sm:$0xf0] }
 0x320   :  { %2274 = vmatpush.bf16.msrb.mxu3 %v3233_v52  ;;  %v3686_v52 = vld [vmem:[%s5499_s16 + $0x14] sm:$0xf]  ;;  %v3441_v0 = vor.u32 %v3739_v61, %v3440_v60  ;;  %v3442_v60 = vld [vmem:[%s5499_s16 + $0x1b8] sm:$0xf0] }
 0x321   :  { %v3237_v55 = vor.u32 %v3686_v52, %v3234_v53  ;;  %v3290_v52 = vld [vmem:[%s5499_s16 + $0x88] sm:$0xf0] }
 0x322   :  { %2333 = vmatpush.bf16.msrb.mxu0 %v3349_v39  ;;  %v3293_v53 = vor.u32 %v3700_v51, %v3290_v52  ;;  %v3740_v51 = vld [vmem:[%s5499_s16 + $0x1c4] sm:$0xf]  ;;  %v3450_v52 = vld [vmem:[%s5499_s16 + $0x1c8] sm:$0xf0] }
 0x324   :  { %2275 = vmatpush.bf16.msrb.mxu3 %v3225_v57  ;;  %v3333_v57 = vor.u32 %v3710_v54, %v3330_v56  ;;  %v3724_v54 = vld [vmem:[%s5499_s16 + $0x144] sm:$0xf] }
 0x326   :  { %2334 = vmatpush.bf16.msrb.mxu0 %v3341_v46  ;;  %v3448_v46 = vld [vmem:[%s5499_s16 + $0x1c0] sm:$0xf] }
 0x328   :  { %2320 = vmatpush.bf16.msra.mxu3 %v3285_v62  ;;  %v3684_v62 = vld [vmem:[%s5499_s16 + $0x4] sm:$0xf] }
 0x329   :  { %v3229_v1 = vor.u32 %v3684_v62, %v3226_v63  ;;  %v1015_v63 = vperm.slane %v5279_v58, 1 }
 0x32a   :  { %2335 = vmatpush.bf16.msrb.mxu0 %v3333_v57 }
 0x32c   :  { %2321 = vmatpush.bf16.msra.mxu3 %v3277_v8  ;;  %v3717_v8 = vld [vmem:[%s5499_s16 + $0x104] sm:$0xf0] }
 0x32d   :  { %v3353_v12 = vor.u32 %v3717_v8, %v3352_v6  ;;  %v3737_v6 = vld [vmem:[%s5499_s16 + $0x1a4] sm:$0xf0] }
 0x32e   :  { %2336 = vmatpush.bf16.msrb.mxu0 %v3325_v4 }
 0x32f   :  { %2301 = vmatpush.bf16.msra.mxu1 %v3353_v12  ;;  %v3720_v12 = vld [vmem:[%s5499_s16 + $0x124] sm:$0xf] }
 0x330   :  { %2322 = vmatpush.bf16.msra.mxu3 %v3269_v18  ;;  %v3730_v18 = vld [vmem:[%s5499_s16 + $0x174] sm:$0xf]  ;;  %v3373_v14 = vor.u32 %v3720_v12, %v3370_v13 }
 0x331   :  { %v3413_v20 = vor.u32 %v3730_v18, %v3410_v19  ;;  %v3718_v18 = vld [vmem:[%s5499_s16 + $0x114] sm:$0xf]  ;;  %v3362_v19 = vld [vmem:[%s5499_s16 + $0x118] sm:$0xf0] }
 0x332   :  { %2337 = vmatpush.bf16.msrb.mxu0 %v3317_v17 }
 0x333   :  { %2346 = vmatpush.bf16.msrb.mxu1 %v3413_v20 }
 0x334   :  { %2323 = vmatpush.bf16.msra.mxu3 %v3261_v27  ;;  %v3704_v27 = vld [vmem:[%s5499_s16 + $0xa4] sm:$0xf] }
 0x335   :  { %v3309_v30 = vor.u32 %v3704_v27, %v3306_v28  ;;  %v3416_v27 = vld [vmem:[%s5499_s16 + $0x180] sm:$0xf]  ;;  %v3733_v28 = vld [vmem:[%s5499_s16 + $0x184] sm:$0xf0] }
 0x336   :  { %v3417_v31 = vor.u32 %v3733_v28, %v3416_v27 }
 0x337   :  { %2338 = vmatpush.bf16.msrb.mxu0 %v3309_v30  ;;  %2347 = vmatpush.bf16.msrb.mxu1 %v3405_v34  ;;  %v3354_v34 = vld [vmem:[%s5499_s16 + $0x108] sm:$0xf0] }
 0x338   :  { %2324 = vmatpush.bf16.msra.mxu3 %v3253_v11  ;;  %v3743_v11 = vld [vmem:[%s5499_s16 + $0x1d4] sm:$0xf0] }
 0x339   :  { %v3457_v39 = vor.u32 %v3743_v11, %v3456_v7  ;;  %v3746_v7 = vld [vmem:[%s5499_s16 + $0x1f4] sm:$0xf]  ;;  %v3474_v11 = vld [vmem:[%s5499_s16 + $0x1f8] sm:$0xf0] }
 0x33b   :  { %2309 = vmatpush.bf16.msra.mxu2 %v3457_v39  ;;  %2339 = vmatpush.bf16.msrb.mxu0 %v3301_v37  ;;  %v3466_v37 = vld [vmem:[%s5499_s16 + $0x1e8] sm:$0xf0] }
 0x33c   :  { %2325 = vmatpush.bf16.msra.mxu3 %v3245_v44  ;;  %v3397_v44 = vor.u32 %v3726_v33, %v3394_v42  ;;  %v3744_v33 = vld [vmem:[%s5499_s16 + $0x1e4] sm:$0xf] }
 0x33d   :  { %v3469_v42 = vor.u32 %v3744_v33, %v3466_v37 }
 0x33e   :  { %v1684_v47 = vpop.f32.mrf.mxu0  ;;  %2348 = vmatpush.bf16.msrb.mxu1 %v3397_v44 }
 0x33f   :  { %v1697_v50 = vpop.f32.mrf.mxu1  ;;  %2340 = vmatpush.bf16.msrb.mxu0 %v3293_v53  ;;  %v3453_v53 = vor.u32 %v3740_v51, %v3450_v52 }
 0x340   :  { %2326 = vmatpush.bf16.msra.mxu3 %v3237_v55  ;;  %v3386_v55 = vld [vmem:[%s5499_s16 + $0x148] sm:$0xf0] }
 0x341   :  { %v3389_v57 = vor.u32 %v3724_v54, %v3386_v55 }
 0x343   :  { %2349 = vmatpush.bf16.msrb.mxu1 %v3389_v57 }
 0x344   :  { %2327 = vmatpush.bf16.msra.mxu3 %v3229_v1  ;;  %v3722_v1 = vld [vmem:[%s5499_s16 + $0x134] sm:$0xf] }
 0x346   :  { %v1686_v5 = vpop.f32.mrf.mxu0 }
 0x347   :  { %v1699_v10 = vpop.f32.mrf.mxu1  ;;  %v3432_v5 = vld [vmem:[%s5499_s16 + $0x1a0] sm:$0xf] }
 0x348   :  { %v3433_v10 = vor.u32 %v3737_v6, %v3432_v5 }
 0x34a   :  { %v1671_v21 = vpop.f32.mrf.mxu3 }
 0x34b   :  { %v1672_v24 = vadd.f32 %v1671_v21, %v1014_v3  ;;  %v1710_v25 = vpop.f32.mrf.mxu2  ;;  %v3381_v3 = vor.u32 %v3722_v1, %v3378_v2  ;;  %v3425_v21 = vor.u32 %v3735_v16, %v3424_v15  ;;  %v3734_v2 = vld [vmem:[%s5499_s16 + $0x194] sm:$0xf] }
 0x34d   :  { %v1685_v32 = vadd.f32 %v1684_v47, %v1672_v24  ;;  %v3741_v47 = vld [vmem:[%s5499_s16 + $0x1c4] sm:$0xf0]  ;;  %2350 = vmatpush.bf16.msrb.mxu1 %v3381_v3  ;;  %v3365_v24 = vor.u32 %v3718_v18, %v3362_v19  ;;  %v3426_v3 = vld [vmem:[%s5499_s16 + $0x198] sm:$0xf0] }
 0x34e   :  { %v1736_v35 = vpop.f32.mrf.mxu0  ;;  %v3429_v6 = vor.u32 %v3734_v2, %v3426_v3 }
 0x34f   :  { %v1698_v36 = vadd.f32 %v1697_v50, %v1685_v32  ;;  %v1749_v38 = vpop.f32.mrf.mxu1  ;;  %v3449_v50 = vor.u32 %v3741_v47, %v3448_v46  ;;  %v3716_v32 = vld [vmem:[%s5499_s16 + $0x104] sm:$0xf]  ;;  %v3742_v46 = vld [vmem:[%s5499_s16 + $0x1d4] sm:$0xf]  ;;  %v3458_v47 = vld [vmem:[%s5499_s16 + $0x1d8] sm:$0xf0] }
 0x351   :  { %v1711_v43 = vadd.f32 %v1710_v25, %v1698_v36  ;;  %2310 = vmatpush.bf16.msra.mxu2 %v3449_v50  ;;  %2351 = vmatpush.bf16.msrb.mxu1 %v3373_v14  ;;  %v1017_v14 = vperm.slane %v5279_v58, 3 }
 0x352   :  { %v1673_v45 = vpop.f32.mrf.mxu3 }
 0x353   :  { %v1870_v48 = vmax.f32 %v1711_v43, 0.0  ;;  %v1712_v49 = vpop.f32.mrf.mxu2 }
 0x355   :  { %v1938_v56 = vpack.c.bf16 %v1870_v48, %v1870_v48  ;;  %2311 = vmatpush.bf16.msra.mxu2 %v3441_v0  ;;  %2352 = vmatpush.bf16.msrb.mxu1 %v3365_v24  ;;  %v3461_v48 = vor.u32 %v3742_v46, %v3458_v47  ;;  %v3434_v0 = vld [vmem:[%s5499_s16 + $0x1a8] sm:$0xf0] }
 0x356   :  { %v1738_v59 = vpop.f32.mrf.mxu0 }
 0x357   :  { %v1751_v62 = vpop.f32.mrf.mxu1  ;;  %2276 = vmatmul.bf16.vlgmr.msrb.gmra.mxu3 %v1938_v56  ;;  %v3738_v59 = vld [vmem:[%s5499_s16 + $0x1b4] sm:$0xf] }
 0x358   :  { %v3445_v61 = vor.u32 %v3738_v59, %v3442_v60 }
 0x359   :  { %2312 = vmatpush.bf16.msra.mxu2 %v3433_v10 }
 0x35a   :  { %v1723_v4 = vpop.f32.mrf.mxu3 }
 0x35b   :  { %v1724_v8 = vadd.f32 %v1723_v4, %v1015_v63  ;;  %v1762_v9 = vpop.f32.mrf.mxu2  ;;  %v3736_v63 = vld [vmem:[%s5499_s16 + $0x1a4] sm:$0xf] }
 0x35c   :  { %v3437_v1 = vor.u32 %v3736_v63, %v3434_v0 }
 0x35d   :  { %v1737_v17 = vadd.f32 %v1736_v35, %v1724_v8  ;;  %2313 = vmatpush.bf16.msra.mxu2 %v3425_v21  ;;  %v3357_v35 = vor.u32 %v3716_v32, %v3354_v34  ;;  %v3732_v8 = vld [vmem:[%s5499_s16 + $0x184] sm:$0xf] }
 0x35e   :  { %v1788_v20 = vpop.f32.mrf.mxu0 }
 0x35f   :  { %v1750_v22 = vadd.f32 %v1749_v38, %v1737_v17  ;;  %v1801_v23 = vpop.f32.mrf.mxu1  ;;  %v3477_v38 = vor.u32 %v3746_v7, %v3474_v11  ;;  %2353 = vmatpush.bf16.msrb.mxu1 %v3357_v35  ;;  %v1942_v7 = vld [vmem:[%s5500_s17] sm:$0x3] }
 0x360   :  { %v1945_v37 = vperm.slane %v1942_v7, 1 }
 0x361   :  { %v1763_v25 = vadd.f32 %v1762_v9, %v1750_v22  ;;  %2314 = vmatpush.bf16.msra.mxu2 %v3417_v31  ;;  %v3418_v9 = vld [vmem:[%s5499_s16 + $0x188] sm:$0xf0] }
 0x362   :  { %v1725_v26 = vpop.f32.mrf.mxu3  ;;  %v3421_v10 = vor.u32 %v3732_v8, %v3418_v9 }
 0x363   :  { %v1871_v29 = vmax.f32 %v1763_v25, 0.0  ;;  %v1764_v30 = vpop.f32.mrf.mxu2 }
 0x365   :  { %v1939_v36 = vpack.c.bf16 %v1871_v29, %v1871_v29  ;;  %2359 = vmatpush.bf16.msrb.mxu2 %v3477_v38 }
 0x366   :  { %v1790_v39 = vpop.f32.mrf.mxu0 }
 0x367   :  { %v1803_v40 = vpop.f32.mrf.mxu1  ;;  %2289 = vmatmul.bf16.vlgmr.msra.gmra.mxu0 %v1939_v36  ;;  %2328 = vmatmul.bf16.vlgmr.msra.gmra.mxu3 %v1938_v56 }
 0x369   :  { %2360 = vmatpush.bf16.msrb.mxu2 %v3469_v42 }
 0x36a   :  { %v1775_v43 = vpop.f32.mrf.mxu3 }
 0x36b   :  { %v1776_v44 = vadd.f32 %v1775_v43, %v1016_v41  ;;  %v1814_v45 = vpop.f32.mrf.mxu2 }
 0x36d   :  { %v1789_v49 = vadd.f32 %v1788_v20, %v1776_v44  ;;  %2361 = vmatpush.bf16.msrb.mxu2 %v3461_v48 }
 0x36f   :  { %v1802_v50 = vadd.f32 %v1801_v23, %v1789_v49 }
 0x371   :  { %v1815_v54 = vadd.f32 %v1814_v45, %v1802_v50  ;;  %2362 = vmatpush.bf16.msrb.mxu2 %v3453_v53 }
 0x372   :  { %v1777_v55 = vpop.f32.mrf.mxu3 }
 0x373   :  { %v1872_v56 = vmax.f32 %v1815_v54, 0.0  ;;  %v1816_v57 = vpop.f32.mrf.mxu2 }
 0x375   :  { %v1940_v62 = vpack.c.bf16 %v1872_v56, %v1872_v56  ;;  %2363 = vmatpush.bf16.msrb.mxu2 %v3445_v61 }
 0x377   :  { %2302 = vmatmul.bf16.vlgmr.msra.gmra.mxu1 %v1940_v62  ;;  %2341 = vmatmul.bf16.vlgmr.msrb.gmra.mxu0 %v1939_v36  ;;  %v1944_v36 = vperm.slane %v1942_v7, 0 }
 0x379   :  { %2364 = vmatpush.bf16.msrb.mxu2 %v3437_v1 }
 0x37d   :  { %2365 = vmatpush.bf16.msrb.mxu2 %v3429_v6 }
 0x37e   :  { %v1840_v4 = vpop.f32.mrf.mxu0 }
 0x37f   :  { %v1853_v5 = vpop.f32.mrf.mxu1 }
 0x381   :  { %2366 = vmatpush.bf16.msrb.mxu2 %v3421_v10 }
 0x386   :  { %v1842_v12 = vpop.f32.mrf.mxu0 }
 0x387   :  { %v1855_v13 = vpop.f32.mrf.mxu1  ;;  %2354 = vmatmul.bf16.vlgmr.msrb.gmra.mxu1 %v1940_v62 }
 0x38a   :  { %v1827_v15 = vpop.f32.mrf.mxu3 }
 0x38b   :  { %v1828_v16 = vadd.f32 %v1827_v15, %v1017_v14  ;;  %v1866_v17 = vpop.f32.mrf.mxu2 }
 0x38d   :  { %v1841_v18 = vadd.f32 %v1840_v4, %v1828_v16 }
 0x38f   :  { %v1854_v19 = vadd.f32 %v1853_v5, %v1841_v18 }
 0x391   :  { %v1867_v20 = vadd.f32 %v1866_v17, %v1854_v19 }
 0x392   :  { %v1829_v21 = vpop.f32.mrf.mxu3 }
 0x393   :  { %v1873_v22 = vmax.f32 %v1867_v20, 0.0  ;;  %v1868_v23 = vpop.f32.mrf.mxu2 }
 0x395   :  { %v1941_v24 = vpack.c.bf16 %v1873_v22, %v1873_v22 }
 0x397   :  { %2315 = vmatmul.bf16.vlgmr.msra.gmra.mxu2 %v1941_v24 }
 0x3a7   :  { %2367 = vmatmul.bf16.vlgmr.msrb.gmra.mxu2 %v1941_v24 }
 0x3da   :  { %v2277_v25 = vpop.f32.mrf.mxu3 }
 0x3db   :  { %v2278_v38 = vadd.f32 %v2277_v25, %v1944_v36 }
 0x3e2   :  { %v2279_v26 = vpop.f32.mrf.mxu3 }
 0x3e4   :  { %v2290_v27 = vpop.f32.mrf.mxu0 }
 0x3e5   :  { %v2291_v39 = vadd.f32 %v2290_v27, %v2278_v38 }
 0x3ea   :  { %v2329_v28 = vpop.f32.mrf.mxu3 }
 0x3eb   :  { %v2330_v43 = vadd.f32 %v2329_v28, %v1945_v37 }
 0x3ec   :  { %v2292_v29 = vpop.f32.mrf.mxu0 }
 0x3f2   :  { %v2331_v58 = vpop.f32.mrf.mxu3 }
 0x3f4   :  { %v2303_v30 = vpop.f32.mrf.mxu1  ;;  %v2342_v31 = vpop.f32.mrf.mxu0 }
 0x3f5   :  { %v2304_v40 = vadd.f32 %v2303_v30, %v2291_v39  ;;  %v2343_v44 = vadd.f32 %v2342_v31, %v2330_v43 }
 0x3fc   :  { %v2305_v32 = vpop.f32.mrf.mxu1  ;;  %v2344_v34 = vpop.f32.mrf.mxu0 }
 0x404   :  { %v2355_v35 = vpop.f32.mrf.mxu1 }
 0x405   :  { %v2356_v45 = vadd.f32 %v2355_v35, %v2343_v44 }
 0x40c   :  { %v2357_v11 = vpop.f32.mrf.mxu1 }
 0x41a   :  { %v2316_v41 = vpop.f32.mrf.mxu2 }
 0x41b   :  { %v2317_v33 = vadd.f32 %v2316_v41, %v2304_v40 }
 0x41d   :  { %2372 = vst [vmem:[#allocation2] sm:$0xff] %v2317_v33 }
 0x422   :  { %v2318_v42 = vpop.f32.mrf.mxu2 }
 0x42a   :  { %v2368_v46 = vpop.f32.mrf.mxu2 }
 0x42b   :  { %v2369_v47 = vadd.f32 %v2368_v46, %v2356_v45 }
 0x42d   :  { %2373 = vst [vmem:[#allocation2 + $0x8] sm:$0xff] %v2369_v47 }
 0x42e   :  { %2384 = dma.vmem_to_hbm [thread:$0]  %s2380_s13, 256, %s2382_s22, [#allocation3]  }
 0x432   :  { %v2370_v48 = vpop.f32.mrf.mxu2 }
 0x433   :  { %3781 = dma.done.wait [#allocation3], 256  }
 0x434   :  { %3782 = vsyncadd [#allocation3], 4294967040 }
 0x435   :  { %2389 = vsyncpa [#allocation3], 1 }

</bundles_post_ra>
